<compile_context>
chip_gen: v7x
topology: tpu7x:2x2x1
jax: 0.10.0
libtpu: 0.0.40
codegen_flags: <defaults>
</compile_context>

<pallas_src>
import math
import functools

import jax
import jax.numpy as jnp
from jax import lax
from jax.experimental import pallas as pl
from jax.experimental.pallas import tpu as pltpu

NEG_BIG = -1e9  # matches the reference mask fill value


def _layernorm(v, g, b, eps=1e-5):
    mu = jnp.mean(v, axis=-1, keepdims=True)
    sigma = jnp.mean((v - mu) ** 2, axis=-1, keepdims=True)
    return g * ((v - mu) / jnp.sqrt(sigma + eps)) + b


def _gelu(x):
    return 0.5 * x * (1.0 + jnp.tanh(math.sqrt(2.0 / math.pi) * (x + 0.044715 * x ** 3)))


def block_kernel(x_ref,
                 val_w_ref, val_b_ref,
                 qk_w_ref, qk_b_ref,
                 cproj_w_ref, cproj_b_ref,
                 ln1_g_ref, ln1_b_ref,
                 fc_w_ref, fc_b_ref,
                 mproj_w_ref, mproj_b_ref,
                 ln2_g_ref, ln2_b_ref,
                 o_ref,
                 *, n_head, q_len, tile, compute_dtype):
    f32 = jnp.float32
    cdt = compute_dtype
    x = x_ref[0]                      # (T, E) f32 -- residual / LayerNorm path stays f32
    T, E = x.shape
    H = n_head
    EH = E * H
    xc = x.astype(cdt)

    # ---------------- value = Conv1D(rf=1): one MXU matmul, f32 accumulation ----------
    value = jnp.dot(xc, val_w_ref[...], preferred_element_type=f32) + val_b_ref[0]  # (T, EH)

    # ---------------- query_key = causal Conv1d(kernel=q_len) -------------------------
    # q_len-tap accumulation; causal shift applied to the (T,E) input via pltpu.roll
    # (XLU slot) + a row mask, instead of an im2col lane-axis concat.
    # The 1/sqrt(E) softmax scale is already folded into the query half of qk_w/qk_b.
    if q_len > 1:
        row_ids = lax.broadcasted_iota(jnp.int32, (T, E), 0)
    qk = None
    for j in range(q_len):
        shift = q_len - 1 - j
        if shift == 0:
            xs = xc
        else:
            xs = jnp.where(row_ids >= shift, pltpu.roll(x, shift, axis=0), 0.0).astype(cdt)
        tap = jnp.dot(xs, qk_w_ref[j], preferred_element_type=f32)
        qk = tap if qk is None else qk + tap
    qk = qk + qk_b_ref[0]                                           # (T, 2*EH) f32

    # ---------------- attention: per-head flash-style tiles, causal block skipping ----
    n_t = T // tile
    # Per-head operand views: one lane-slice copy each, no (T,H,E)->(H,T,E) swapaxes.
    q_heads = [qk[:, h * E:(h + 1) * E].astype(cdt) for h in range(H)]
    k_heads = [qk[:, EH + h * E:EH + (h + 1) * E].astype(cdt) for h in range(H)]
    v_heads = [value[:, h * E:(h + 1) * E].astype(cdt) for h in range(H)]
    cw_all = cproj_w_ref[...]                                        # (EH, E) cdt
    cw_heads = [cw_all[h * E:(h + 1) * E, :] for h in range(H)]      # sublane slices

    rr = lax.broadcasted_iota(jnp.int32, (tile, tile), 0)
    cc = lax.broadcasted_iota(jnp.int32, (tile, tile), 1)
    diag_keep = rr >= cc              # tril mask, only needed on diagonal blocks

    dn = (((1,), (1,)), ((), ()))     # contract last dims: Q @ K^T without relayout
    attn_tiles = []
    for qi in range(n_t):             # static loops: skipping is free at trace time
        r0 = qi * tile
        tile_acc = jnp.zeros((tile, E), f32)
        for h in range(H):
            q_blk = q_heads[h][r0:r0 + tile, :]
            m = l = acc = None
            for ki in range(qi + 1):  # kv blocks above the diagonal are skipped
                c0 = ki * tile
                k_blk = k_heads[h][c0:c0 + tile, :]
                v_blk = v_heads[h][c0:c0 + tile, :]
                s = lax.dot_general(q_blk, k_blk, dn, preferred_element_type=f32)
                if ki == qi:
                    s = jnp.where(diag_keep, s, NEG_BIG)
                if ki == 0:
                    m = jnp.max(s, axis=-1, keepdims=True)
                    p = jnp.exp(s - m)
                    l = jnp.sum(p, axis=-1, keepdims=True)
                    acc = jnp.dot(p.astype(cdt), v_blk, preferred_element_type=f32)
                else:                  # online softmax update
                    m_new = jnp.maximum(m, jnp.max(s, axis=-1, keepdims=True))
                    alpha = jnp.exp(m - m_new)
                    p = jnp.exp(s - m_new)
                    l = alpha * l + jnp.sum(p, axis=-1, keepdims=True)
                    acc = alpha * acc + jnp.dot(p.astype(cdt), v_blk,
                                                preferred_element_type=f32)
                    m = m_new
            ctx = acc * pl.reciprocal(l, approx=True)                 # EUP slot
            # merge_heads + c_proj folded: accumulate per-head projection in f32.
            tile_acc = tile_acc + jnp.dot(ctx.astype(cdt), cw_heads[h],
                                          preferred_element_type=f32)
        attn_tiles.append(tile_acc)
    attn_out = attn_tiles[0] if n_t == 1 else jnp.concatenate(attn_tiles, axis=0)
    attn_out = attn_out + cproj_b_ref[0]                              # (T, E)

    # ---------------- residual + LayerNorm 1 (f32) ----------------
    hidden = _layernorm(x + attn_out, ln1_g_ref[0], ln1_b_ref[0])

    # ---------------- MLP ----------------
    h1 = jnp.dot(hidden.astype(cdt), fc_w_ref[...], preferred_element_type=f32) + fc_b_ref[0]
    h1 = _gelu(h1)
    h2 = jnp.dot(h1.astype(cdt), mproj_w_ref[...], preferred_element_type=f32) + mproj_b_ref[0]

    # ---------------- residual + LayerNorm 2 (f32) ----------------
    out = _layernorm(hidden + h2, ln2_g_ref[0], ln2_b_ref[0])
    # TODO(synk): pad E (and 2*E*H / 2*E) to multiples of 128 in the wrapper and slice the
    # result, so stores are lane-dense for non-128-multiple embedding widths.
    o_ref[0] = out.astype(o_ref.dtype)


def _vmem_limit_bytes(T, E, H, q_len, tile, param_bytes, cbytes):
    """Real per-grid-step VMEM requirement (no artificial 48 MiB cap) + headroom."""
    f32b = 4
    act = 0
    act += (f32b + 2 * cbytes) * T * E            # x block, cdt cast, shifted conv tap
    act += f32b * T * (2 * E * H)                 # qk accumulator
    act += f32b * T * (E * H)                     # value
    act += 3 * cbytes * H * T * E                 # per-head q/k/v views
    act += 2 * (f32b + cbytes) * tile * tile      # score / prob blocks (+ cdt cast)
    act += f32b * (3 * tile * E + 2 * tile)       # acc / ctx / tile_acc, m / l
    act += f32b * T * E * 6                       # attn_out, residuals, hidden, LN temps
    act += f32b * T * (2 * E) * 2                 # MLP intermediates
    io = 2 * 2 * f32b * T * E                     # double-buffered x / out blocks
    # params counted double-buffered (conservative, also covers the Buffered(1) fallback)
    total = 2 * param_bytes + io + 2 * act + 16 * 2 ** 20
    # TODO(synk): error out (instead of clamping) when total exceeds the target chip's
    # physical VMEM (64 MiB on v7x) and fall back to a kv-chunked variant.
    return int(min(total, 112 * 2 ** 20))


def block_forward(x, params, *, n_head, q_len, scale=True,
                  compute_dtype=jnp.float32, attn_tile=None,
                  single_buffer_weights=True):
    B, T, E = x.shape
    H = n_head
    cdt = jnp.dtype(compute_dtype)

    if attn_tile is None:
        attn_tile = next((c for c in (512, 256, 128, 64, 32, 16, 8) if T % c == 0), T)
    assert T % attn_tile == 0

    # Fold the 1/sqrt(E) softmax scale into the query half of the conv weight/bias
    # (free at trace time -> removes a full VPU pass over the score tensor).
    qk_w, qk_b = params["qk_w"], params["qk_b"]
    if scale:
        inv = 1.0 / math.sqrt(E)
        qk_w = qk_w.at[..., :E * H].multiply(inv)
        qk_b = qk_b.at[..., :E * H].multiply(inv)

    # Matmul-operand casts once, outside the kernel. Biases / LayerNorm params stay f32.
    param_list = [
        params["val_w"].astype(cdt), params["val_b"],
        qk_w.astype(cdt), qk_b,                       # (q_len, E, 2*E*H) conv taps
        params["cproj_w"].astype(cdt), params["cproj_b"],
        params["ln1_g"], params["ln1_b"],
        params["fc_w"].astype(cdt), params["fc_b"],
        params["mproj_w"].astype(cdt), params["mproj_b"],
        params["ln2_g"], params["ln2_b"],
    ]

    kernel = functools.partial(block_kernel, n_head=H, q_len=q_len,
                               tile=attn_tile, compute_dtype=cdt)
    param_bytes = sum(int(p.size) * p.dtype.itemsize for p in param_list)
    vmem_limit = _vmem_limit_bytes(T, E, H, q_len, attn_tile, param_bytes, cdt.itemsize)

    def build(buffered_weights):
        in_specs = [pl.BlockSpec((1, T, E), lambda b: (b, 0, 0))]
        for p in param_list:
            kw = {"pipeline_mode": pl.Buffered(1)} if buffered_weights else {}
            in_specs.append(pl.BlockSpec(p.shape, lambda b, nd=p.ndim: (0,) * nd, **kw))
        return pl.pallas_call(
            kernel,
            out_shape=jax.ShapeDtypeStruct((B, T, E), x.dtype),
            grid_spec=pltpu.PrefetchScalarGridSpec(
                num_scalar_prefetch=0,
                grid=(B,),
                in_specs=in_specs,
                out_specs=pl.BlockSpec((1, T, E), lambda b: (b, 0, 0)),
            ),
            compiler_params=pltpu.CompilerParams(
                dimension_semantics=("parallel",),
                vmem_limit_bytes=vmem_limit),
        )

    # TODO(synk): for small B on v7x (2 TensorCores) add a parallel query-tile / head grid
    # axis so both cores stay busy; heads would then accumulate via an 'arbitrary' axis.
    if single_buffer_weights:
        try:
            return build(True)(x, *param_list)
        except Exception:
            # Older jax without BlockSpec pipeline_mode / Buffered(1): default 2x buffering.
            pass
    return build(False)(x, *param_list)


# ------------------------- pure-JAX reference (f32) -------------------------
def block_reference(x, params, *, n_head, q_len, scale=True):
    B, T, E = x.shape
    H = n_head
    value = x @ params["val_w"] + params["val_b"][0]
    x_pad = jnp.concatenate([jnp.zeros((B, q_len - 1, E), x.dtype), x], axis=1)
    qk = jnp.zeros((B, T, 2 * E * H), jnp.float32)
    for j in range(q_len):
        qk = qk + jnp.einsum("bte,ef->btf", x_pad[:, j:j + T, :], params["qk_w"][j])
    qk = qk + params["qk_b"][0]
    query, key = qk[..., :E * H], qk[..., E * H:]

    def split(v):  # (B,T,E*H) -> (B,H,T,E)
        return v.reshape(B, T, H, E).transpose(0, 2, 1, 3)

    q, k, v = split(query), split(key), split(value)
    pre = jnp.einsum("bhte,bhse->bhts", q, k)
    if scale:
        pre = pre / math.sqrt(E)
    mask = jnp.tril(jnp.ones((T, T), jnp.float32))
    pre = pre * mask + (-1e9) * (1.0 - mask)
    p = jax.nn.softmax(pre, axis=-1)
    attn = jnp.einsum("bhts,bhse->bhte", p, v)
    attn = attn.transpose(0, 2, 1, 3).reshape(B, T, H * E)
    attn = attn @ params["cproj_w"] + params["cproj_b"][0]

    hidden = _layernorm(x + attn, params["ln1_g"][0], params["ln1_b"][0])
    h1 = _gelu(hidden @ params["fc_w"] + params["fc_b"][0])
    h2 = h1 @ params["mproj_w"] + params["mproj_b"][0]
    return _layernorm(hidden + h2, params["ln2_g"][0], params["ln2_b"][0])


if __name__ == "__main__":
    # small shapes consistent with Block(n_head, win_len, n_embd, scale, q_len, sub_len)
    B, n_head, n_embd, win_len, q_len = 2, 2, 32, 8, 2
    E, H, T = n_embd, n_head, win_len

    key = jax.random.PRNGKey(0)
    ks = jax.random.split(key, 16)
    std = 0.02
    params = {
        "val_w":   jax.random.normal(ks[0], (E, E * H), jnp.float32) * std,
        "val_b":   jnp.zeros((1, E * H), jnp.float32),
        "qk_w":    jax.random.normal(ks[1], (q_len, E, 2 * E * H), jnp.float32) * std,
        "qk_b":    jax.random.normal(ks[2], (1, 2 * E * H), jnp.float32) * std,
        "cproj_w": jax.random.normal(ks[3], (E * H, E), jnp.float32) * std,
        "cproj_b": jnp.zeros((1, E), jnp.float32),
        "ln1_g":   jnp.ones((1, E), jnp.float32),
        "ln1_b":   jnp.zeros((1, E), jnp.float32),
        "fc_w":    jax.random.normal(ks[4], (E, 2 * E), jnp.float32) * std,
        "fc_b":    jnp.zeros((1, 2 * E), jnp.float32),
        "mproj_w": jax.random.normal(ks[5], (2 * E, E), jnp.float32) * std,
        "mproj_b": jnp.zeros((1, E), jnp.float32),
        "ln2_g":   jnp.ones((1, E), jnp.float32),
        "ln2_b":   jnp.zeros((1, E), jnp.float32),
    }

    x = jax.random.normal(ks[6], (B, T, E), jnp.float32)

    ref = block_reference(x, params, n_head=n_head, q_len=q_len, scale=True)

    # f32 compute path: tight check vs reference (approx reciprocal is the only delta).
    out_f32 = jax.block_until_ready(
        block_forward(x, params, n_head=n_head, q_len=q_len, scale=True,
                      compute_dtype=jnp.float32))
    assert out_f32.shape == (B, T, E)
    err32 = float(jnp.max(jnp.abs(out_f32 - ref)))
    assert jnp.allclose(out_f32, ref, rtol=2e-3, atol=2e-3), err32

    # bf16 matmul operands (f32 accumulation / LN / softmax): looser check.
    out_bf16 = jax.block_until_ready(
        block_forward(x, params, n_head=n_head, q_len=q_len, scale=True,
                      compute_dtype=jnp.bfloat16))
    errbf = float(jnp.max(jnp.abs(out_bf16 - ref)))
    assert jnp.allclose(out_bf16, ref, rtol=5e-2, atol=5e-2), errbf

    print("KERNEL_OK")
</pallas_src>

<mosaic_0001>
module attributes {stable_mosaic.version = 11 : i64} {
  func.func @block_kernel(%arg0: i32, %arg1: memref<1x8x32xf32, #tpu.memory_space<vmem>>, %arg2: memref<32x64xf32, #tpu.memory_space<vmem>>, %arg3: memref<1x64xf32, #tpu.memory_space<vmem>>, %arg4: memref<2x32x128xf32, #tpu.memory_space<vmem>>, %arg5: memref<1x128xf32, #tpu.memory_space<vmem>>, %arg6: memref<64x32xf32, #tpu.memory_space<vmem>>, %arg7: memref<1x32xf32, #tpu.memory_space<vmem>>, %arg8: memref<1x32xf32, #tpu.memory_space<vmem>>, %arg9: memref<1x32xf32, #tpu.memory_space<vmem>>, %arg10: memref<32x64xf32, #tpu.memory_space<vmem>>, %arg11: memref<1x64xf32, #tpu.memory_space<vmem>>, %arg12: memref<64x32xf32, #tpu.memory_space<vmem>>, %arg13: memref<1x32xf32, #tpu.memory_space<vmem>>, %arg14: memref<1x32xf32, #tpu.memory_space<vmem>>, %arg15: memref<1x32xf32, #tpu.memory_space<vmem>>, %arg16: memref<1x8x32xf32, #tpu.memory_space<vmem>>) attributes {dimension_semantics = [#tpu.dimension_semantics<parallel>], iteration_bounds = array<i64: 2>, scalar_prefetch = 0 : i64, scratch_operands = 0 : i64, tpu.core_type = #tpu.core_type<tc>, window_params = [{transform_indices = @transform_0, window_bounds = array<i64: 1, 8, 32>}, {pipeline_mode = #tpu.pipeline_mode<synchronous>, transform_indices = @transform_1, window_bounds = array<i64: 32, 64>}, {pipeline_mode = #tpu.pipeline_mode<synchronous>, transform_indices = @transform_2, window_bounds = array<i64: 1, 64>}, {pipeline_mode = #tpu.pipeline_mode<synchronous>, transform_indices = @transform_3, window_bounds = array<i64: 2, 32, 128>}, {pipeline_mode = #tpu.pipeline_mode<synchronous>, transform_indices = @transform_4, window_bounds = array<i64: 1, 128>}, {pipeline_mode = #tpu.pipeline_mode<synchronous>, transform_indices = @transform_5, window_bounds = array<i64: 64, 32>}, {pipeline_mode = #tpu.pipeline_mode<synchronous>, transform_indices = @transform_6, window_bounds = array<i64: 1, 32>}, {pipeline_mode = #tpu.pipeline_mode<synchronous>, transform_indices = @transform_7, window_bounds = array<i64: 1, 32>}, {pipeline_mode = #tpu.pipeline_mode<synchronous>, transform_indices = @transform_8, window_bounds = array<i64: 1, 32>}, {pipeline_mode = #tpu.pipeline_mode<synchronous>, transform_indices = @transform_9, window_bounds = array<i64: 32, 64>}, {pipeline_mode = #tpu.pipeline_mode<synchronous>, transform_indices = @transform_10, window_bounds = array<i64: 1, 64>}, {pipeline_mode = #tpu.pipeline_mode<synchronous>, transform_indices = @transform_11, window_bounds = array<i64: 64, 32>}, {pipeline_mode = #tpu.pipeline_mode<synchronous>, transform_indices = @transform_12, window_bounds = array<i64: 1, 32>}, {pipeline_mode = #tpu.pipeline_mode<synchronous>, transform_indices = @transform_13, window_bounds = array<i64: 1, 32>}, {pipeline_mode = #tpu.pipeline_mode<synchronous>, transform_indices = @transform_14, window_bounds = array<i64: 1, 32>}, {transform_indices = @transform_15, window_bounds = array<i64: 1, 8, 32>}]} {
    %c0 = arith.constant 0 : index
    %c0_0 = arith.constant 0 : index
    %c0_1 = arith.constant 0 : index
    %0 = vector.load %arg1[%c0, %c0_0, %c0_1] : memref<1x8x32xf32, #tpu.memory_space<vmem>>, vector<1x8x32xf32>
    %1 = vector.shape_cast %0 : vector<1x8x32xf32> to vector<8x32xf32>
    %c0_2 = arith.constant 0 : index
    %c0_3 = arith.constant 0 : index
    %2 = vector.load %arg2[%c0_2, %c0_3] : memref<32x64xf32, #tpu.memory_space<vmem>>, vector<32x64xf32>
    %cst = arith.constant dense<0.000000e+00> : vector<8x64xf32>
    %3 = tpu.matmul %1, %2, %cst {dimension_numbers = #tpu.dot_dimension_numbers<[1], [0], [0], [1], [0, 0, 1, 1], [], []>} : vector<8x32xf32>, vector<32x64xf32>, vector<8x64xf32> -> vector<8x64xf32>
    %c0_4 = arith.constant 0 : index
    %c0_5 = arith.constant 0 : index
    %4 = vector.load %arg3[%c0_4, %c0_5] : memref<1x64xf32, #tpu.memory_space<vmem>>, vector<1x64xf32>
    %5 = vector.shape_cast %4 : vector<1x64xf32> to vector<64xf32>
    %6 = vector.shape_cast %5 : vector<64xf32> to vector<1x64xf32>
    %7 = vector.broadcast %6 : vector<1x64xf32> to vector<8x64xf32>
    %8 = arith.addf %3, %7 : vector<8x64xf32>
    %9 = tpu.iota {dimensions = array<i32: 0>} : vector<8x32xi32>
    %c1_i32 = arith.constant 1 : i32
    %10 = vector.broadcast %c1_i32 : i32 to vector<8x32xi32>
    %11 = arith.cmpi sge, %9, %10 : vector<8x32xi32>
    %c1_i32_6 = arith.constant 1 : i32
    %12 = tpu.dynamic_rotate %1 by %c1_i32_6 dim 0 : vector<8x32xf32>, i32 -> vector<8x32xf32>
    %cst_7 = arith.constant 0.000000e+00 : f32
    %13 = vector.broadcast %cst_7 : f32 to vector<8x32xf32>
    %14 = arith.select %11, %12, %13 : vector<8x32xi1>, vector<8x32xf32>
    %c0_8 = arith.constant 0 : index
    %c0_9 = arith.constant 0 : index
    %c0_10 = arith.constant 0 : index
    %15 = vector.load %arg4[%c0_8, %c0_9, %c0_10] : memref<2x32x128xf32, #tpu.memory_space<vmem>>, vector<1x32x128xf32>
    %16 = vector.shape_cast %15 : vector<1x32x128xf32> to vector<32x128xf32>
    %cst_11 = arith.constant dense<0.000000e+00> : vector<8x128xf32>
    %17 = tpu.matmul %14, %16, %cst_11 {dimension_numbers = #tpu.dot_dimension_numbers<[1], [0], [0], [1], [0, 0, 1, 1], [], []>} : vector<8x32xf32>, vector<32x128xf32>, vector<8x128xf32> -> vector<8x128xf32>
    %c1 = arith.constant 1 : index
    %c0_12 = arith.constant 0 : index
    %c0_13 = arith.constant 0 : index
    %18 = vector.load %arg4[%c1, %c0_12, %c0_13] : memref<2x32x128xf32, #tpu.memory_space<vmem>>, vector<1x32x128xf32>
    %19 = vector.shape_cast %18 : vector<1x32x128xf32> to vector<32x128xf32>
    %cst_14 = arith.constant dense<0.000000e+00> : vector<8x128xf32>
    %20 = tpu.matmul %1, %19, %cst_14 {dimension_numbers = #tpu.dot_dimension_numbers<[1], [0], [0], [1], [0, 0, 1, 1], [], []>} : vector<8x32xf32>, vector<32x128xf32>, vector<8x128xf32> -> vector<8x128xf32>
    %21 = arith.addf %17, %20 : vector<8x128xf32>
    %c0_15 = arith.constant 0 : index
    %c0_16 = arith.constant 0 : index
    %22 = vector.load %arg5[%c0_15, %c0_16] : memref<1x128xf32, #tpu.memory_space<vmem>>, vector<1x128xf32>
    %23 = vector.shape_cast %22 : vector<1x128xf32> to vector<128xf32>
    %24 = vector.shape_cast %23 : vector<128xf32> to vector<1x128xf32>
    %25 = vector.broadcast %24 : vector<1x128xf32> to vector<8x128xf32>
    %26 = arith.addf %21, %25 : vector<8x128xf32>
    %27 = vector.extract_strided_slice %26 {offsets = [0, 0], sizes = [8, 32], strides = [1, 1]} : vector<8x128xf32> to vector<8x32xf32>
    %28 = vector.extract_strided_slice %26 {offsets = [0, 32], sizes = [8, 32], strides = [1, 1]} : vector<8x128xf32> to vector<8x32xf32>
    %29 = vector.extract_strided_slice %26 {offsets = [0, 64], sizes = [8, 32], strides = [1, 1]} : vector<8x128xf32> to vector<8x32xf32>
    %30 = vector.extract_strided_slice %26 {offsets = [0, 96], sizes = [8, 32], strides = [1, 1]} : vector<8x128xf32> to vector<8x32xf32>
    %31 = vector.extract_strided_slice %8 {offsets = [0, 0], sizes = [8, 32], strides = [1, 1]} : vector<8x64xf32> to vector<8x32xf32>
    %32 = vector.extract_strided_slice %8 {offsets = [0, 32], sizes = [8, 32], strides = [1, 1]} : vector<8x64xf32> to vector<8x32xf32>
    %c0_17 = arith.constant 0 : index
    %c0_18 = arith.constant 0 : index
    %33 = vector.load %arg6[%c0_17, %c0_18] : memref<64x32xf32, #tpu.memory_space<vmem>>, vector<64x32xf32>
    %34 = vector.extract_strided_slice %33 {offsets = [0, 0], sizes = [32, 32], strides = [1, 1]} : vector<64x32xf32> to vector<32x32xf32>
    %35 = vector.extract_strided_slice %33 {offsets = [32, 0], sizes = [32, 32], strides = [1, 1]} : vector<64x32xf32> to vector<32x32xf32>
    %36 = tpu.iota {dimensions = array<i32: 0>} : vector<8x8xi32>
    %37 = tpu.iota {dimensions = array<i32: 1>} : vector<8x8xi32>
    %38 = arith.cmpi sge, %36, %37 : vector<8x8xi32>
    %cst_19 = arith.constant 0.000000e+00 : f32
    %39 = vector.broadcast %cst_19 : f32 to vector<8x32xf32>
    %cst_20 = arith.constant dense<0.000000e+00> : vector<8x8xf32>
    %40 = tpu.matmul %27, %29, %cst_20 {dimension_numbers = #tpu.dot_dimension_numbers<[1], [1], [0], [0], [0, 0, 1, 0], [], []>} : vector<8x32xf32>, vector<8x32xf32>, vector<8x8xf32> -> vector<8x8xf32>
    %cst_21 = arith.constant -1.000000e+09 : f32
    %41 = vector.broadcast %cst_21 : f32 to vector<8x8xf32>
    %42 = arith.select %38, %40, %41 : vector<8x8xi1>, vector<8x8xf32>
    %cst_22 = arith.constant dense<0xFF800000> : vector<8xf32>
    %43 = vector.multi_reduction <maximumf>, %42, %cst_22 [1] : vector<8x8xf32> to vector<8xf32>
    %44 = vector.shape_cast %43 : vector<8xf32> to vector<8x1xf32>
    %45 = vector.broadcast %44 : vector<8x1xf32> to vector<8x8xf32>
    %46 = arith.subf %42, %45 : vector<8x8xf32>
    %47 = math.exp %46 : vector<8x8xf32>
    %cst_23 = arith.constant dense<0.000000e+00> : vector<8xf32>
    %48 = vector.multi_reduction <add>, %47, %cst_23 [1] : vector<8x8xf32> to vector<8xf32>
    %49 = vector.shape_cast %48 : vector<8xf32> to vector<8x1xf32>
    %cst_24 = arith.constant dense<0.000000e+00> : vector<8x32xf32>
    %50 = tpu.matmul %47, %31, %cst_24 {dimension_numbers = #tpu.dot_dimension_numbers<[1], [0], [0], [1], [0, 0, 1, 1], [], []>} : vector<8x8xf32>, vector<8x32xf32>, vector<8x32xf32> -> vector<8x32xf32>
    %51 = tpu.reciprocal %49 {approx = true} : vector<8x1xf32> -> vector<8x1xf32>
    %52 = vector.broadcast %51 : vector<8x1xf32> to vector<8x32xf32>
    %53 = arith.mulf %50, %52 : vector<8x32xf32>
    %cst_25 = arith.constant dense<0.000000e+00> : vector<8x32xf32>
    %54 = tpu.matmul %53, %34, %cst_25 {dimension_numbers = #tpu.dot_dimension_numbers<[1], [0], [0], [1], [0, 0, 1, 1], [], []>} : vector<8x32xf32>, vector<32x32xf32>, vector<8x32xf32> -> vector<8x32xf32>
    %55 = arith.addf %39, %54 : vector<8x32xf32>
    %cst_26 = arith.constant dense<0.000000e+00> : vector<8x8xf32>
    %56 = tpu.matmul %28, %30, %cst_26 {dimension_numbers = #tpu.dot_dimension_numbers<[1], [1], [0], [0], [0, 0, 1, 0], [], []>} : vector<8x32xf32>, vector<8x32xf32>, vector<8x8xf32> -> vector<8x8xf32>
    %cst_27 = arith.constant -1.000000e+09 : f32
    %57 = vector.broadcast %cst_27 : f32 to vector<8x8xf32>
    %58 = arith.select %38, %56, %57 : vector<8x8xi1>, vector<8x8xf32>
    %cst_28 = arith.constant dense<0xFF800000> : vector<8xf32>
    %59 = vector.multi_reduction <maximumf>, %58, %cst_28 [1] : vector<8x8xf32> to vector<8xf32>
    %60 = vector.shape_cast %59 : vector<8xf32> to vector<8x1xf32>
    %61 = vector.broadcast %60 : vector<8x1xf32> to vector<8x8xf32>
    %62 = arith.subf %58, %61 : vector<8x8xf32>
    %63 = math.exp %62 : vector<8x8xf32>
    %cst_29 = arith.constant dense<0.000000e+00> : vector<8xf32>
    %64 = vector.multi_reduction <add>, %63, %cst_29 [1] : vector<8x8xf32> to vector<8xf32>
    %65 = vector.shape_cast %64 : vector<8xf32> to vector<8x1xf32>
    %cst_30 = arith.constant dense<0.000000e+00> : vector<8x32xf32>
    %66 = tpu.matmul %63, %32, %cst_30 {dimension_numbers = #tpu.dot_dimension_numbers<[1], [0], [0], [1], [0, 0, 1, 1], [], []>} : vector<8x8xf32>, vector<8x32xf32>, vector<8x32xf32> -> vector<8x32xf32>
    %67 = tpu.reciprocal %65 {approx = true} : vector<8x1xf32> -> vector<8x1xf32>
    %68 = vector.broadcast %67 : vector<8x1xf32> to vector<8x32xf32>
    %69 = arith.mulf %66, %68 : vector<8x32xf32>
    %cst_31 = arith.constant dense<0.000000e+00> : vector<8x32xf32>
    %70 = tpu.matmul %69, %35, %cst_31 {dimension_numbers = #tpu.dot_dimension_numbers<[1], [0], [0], [1], [0, 0, 1, 1], [], []>} : vector<8x32xf32>, vector<32x32xf32>, vector<8x32xf32> -> vector<8x32xf32>
    %71 = arith.addf %55, %70 : vector<8x32xf32>
    %c0_32 = arith.constant 0 : index
    %c0_33 = arith.constant 0 : index
    %72 = vector.load %arg7[%c0_32, %c0_33] : memref<1x32xf32, #tpu.memory_space<vmem>>, vector<1x32xf32>
    %73 = vector.shape_cast %72 : vector<1x32xf32> to vector<32xf32>
    %74 = vector.shape_cast %73 : vector<32xf32> to vector<1x32xf32>
    %75 = vector.broadcast %74 : vector<1x32xf32> to vector<8x32xf32>
    %76 = arith.addf %71, %75 : vector<8x32xf32>
    %77 = arith.addf %1, %76 : vector<8x32xf32>
    %c0_34 = arith.constant 0 : index
    %c0_35 = arith.constant 0 : index
    %78 = vector.load %arg8[%c0_34, %c0_35] : memref<1x32xf32, #tpu.memory_space<vmem>>, vector<1x32xf32>
    %79 = vector.shape_cast %78 : vector<1x32xf32> to vector<32xf32>
    %c0_36 = arith.constant 0 : index
    %c0_37 = arith.constant 0 : index
    %80 = vector.load %arg9[%c0_36, %c0_37] : memref<1x32xf32, #tpu.memory_space<vmem>>, vector<1x32xf32>
    %81 = vector.shape_cast %80 : vector<1x32xf32> to vector<32xf32>
    %cst_38 = arith.constant dense<0.000000e+00> : vector<8xf32>
    %82 = vector.multi_reduction <add>, %77, %cst_38 [1] : vector<8x32xf32> to vector<8xf32>
    %83 = vector.shape_cast %82 : vector<8xf32> to vector<8x1xf32>
    %cst_39 = arith.constant 3.200000e+01 : f32
    %84 = vector.broadcast %cst_39 : f32 to vector<8x1xf32>
    %85 = arith.divf %83, %84 : vector<8x1xf32>
    %86 = vector.broadcast %85 : vector<8x1xf32> to vector<8x32xf32>
    %87 = arith.subf %77, %86 : vector<8x32xf32>
    %88 = arith.mulf %87, %87 : vector<8x32xf32>
    %cst_40 = arith.constant dense<0.000000e+00> : vector<8xf32>
    %89 = vector.multi_reduction <add>, %88, %cst_40 [1] : vector<8x32xf32> to vector<8xf32>
    %90 = vector.shape_cast %89 : vector<8xf32> to vector<8x1xf32>
    %cst_41 = arith.constant 3.200000e+01 : f32
    %91 = vector.broadcast %cst_41 : f32 to vector<8x1xf32>
    %92 = arith.divf %90, %91 : vector<8x1xf32>
    %93 = vector.broadcast %85 : vector<8x1xf32> to vector<8x32xf32>
    %94 = arith.subf %77, %93 : vector<8x32xf32>
    %cst_42 = arith.constant 9.99999974E-6 : f32
    %95 = vector.broadcast %cst_42 : f32 to vector<8x1xf32>
    %96 = arith.addf %92, %95 : vector<8x1xf32>
    %97 = math.sqrt %96 : vector<8x1xf32>
    %98 = vector.broadcast %97 : vector<8x1xf32> to vector<8x32xf32>
    %99 = arith.divf %94, %98 : vector<8x32xf32>
    %100 = vector.shape_cast %79 : vector<32xf32> to vector<1x32xf32>
    %101 = vector.broadcast %100 : vector<1x32xf32> to vector<8x32xf32>
    %102 = arith.mulf %101, %99 : vector<8x32xf32>
    %103 = vector.shape_cast %81 : vector<32xf32> to vector<1x32xf32>
    %104 = vector.broadcast %103 : vector<1x32xf32> to vector<8x32xf32>
    %105 = arith.addf %102, %104 : vector<8x32xf32>
    %c0_43 = arith.constant 0 : index
    %c0_44 = arith.constant 0 : index
    %106 = vector.load %arg10[%c0_43, %c0_44] : memref<32x64xf32, #tpu.memory_space<vmem>>, vector<32x64xf32>
    %cst_45 = arith.constant dense<0.000000e+00> : vector<8x64xf32>
    %107 = tpu.matmul %105, %106, %cst_45 {dimension_numbers = #tpu.dot_dimension_numbers<[1], [0], [0], [1], [0, 0, 1, 1], [], []>} : vector<8x32xf32>, vector<32x64xf32>, vector<8x64xf32> -> vector<8x64xf32>
    %c0_46 = arith.constant 0 : index
    %c0_47 = arith.constant 0 : index
    %108 = vector.load %arg11[%c0_46, %c0_47] : memref<1x64xf32, #tpu.memory_space<vmem>>, vector<1x64xf32>
    %109 = vector.shape_cast %108 : vector<1x64xf32> to vector<64xf32>
    %110 = vector.shape_cast %109 : vector<64xf32> to vector<1x64xf32>
    %111 = vector.broadcast %110 : vector<1x64xf32> to vector<8x64xf32>
    %112 = arith.addf %107, %111 : vector<8x64xf32>
    %cst_48 = arith.constant 5.000000e-01 : f32
    %113 = vector.broadcast %cst_48 : f32 to vector<8x64xf32>
    %114 = arith.mulf %113, %112 : vector<8x64xf32>
    %115 = arith.mulf %112, %112 : vector<8x64xf32>
    %116 = arith.mulf %112, %115 : vector<8x64xf32>
    %cst_49 = arith.constant 4.471500e-02 : f32
    %117 = vector.broadcast %cst_49 : f32 to vector<8x64xf32>
    %118 = arith.mulf %117, %116 : vector<8x64xf32>
    %119 = arith.addf %112, %118 : vector<8x64xf32>
    %cst_50 = arith.constant 0.797884583 : f32
    %120 = vector.broadcast %cst_50 : f32 to vector<8x64xf32>
    %121 = arith.mulf %120, %119 : vector<8x64xf32>
    %122 = math.tanh %121 : vector<8x64xf32>
    %cst_51 = arith.constant 1.000000e+00 : f32
    %123 = vector.broadcast %cst_51 : f32 to vector<8x64xf32>
    %124 = arith.addf %123, %122 : vector<8x64xf32>
    %125 = arith.mulf %114, %124 : vector<8x64xf32>
    %c0_52 = arith.constant 0 : index
    %c0_53 = arith.constant 0 : index
    %126 = vector.load %arg12[%c0_52, %c0_53] : memref<64x32xf32, #tpu.memory_space<vmem>>, vector<64x32xf32>
    %cst_54 = arith.constant dense<0.000000e+00> : vector<8x32xf32>
    %127 = tpu.matmul %125, %126, %cst_54 {dimension_numbers = #tpu.dot_dimension_numbers<[1], [0], [0], [1], [0, 0, 1, 1], [], []>} : vector<8x64xf32>, vector<64x32xf32>, vector<8x32xf32> -> vector<8x32xf32>
    %c0_55 = arith.constant 0 : index
    %c0_56 = arith.constant 0 : index
    %128 = vector.load %arg13[%c0_55, %c0_56] : memref<1x32xf32, #tpu.memory_space<vmem>>, vector<1x32xf32>
    %129 = vector.shape_cast %128 : vector<1x32xf32> to vector<32xf32>
    %130 = vector.shape_cast %129 : vector<32xf32> to vector<1x32xf32>
    %131 = vector.broadcast %130 : vector<1x32xf32> to vector<8x32xf32>
    %132 = arith.addf %127, %131 : vector<8x32xf32>
    %133 = arith.addf %105, %132 : vector<8x32xf32>
    %c0_57 = arith.constant 0 : index
    %c0_58 = arith.constant 0 : index
    %134 = vector.load %arg14[%c0_57, %c0_58] : memref<1x32xf32, #tpu.memory_space<vmem>>, vector<1x32xf32>
    %135 = vector.shape_cast %134 : vector<1x32xf32> to vector<32xf32>
    %c0_59 = arith.constant 0 : index
    %c0_60 = arith.constant 0 : index
    %136 = vector.load %arg15[%c0_59, %c0_60] : memref<1x32xf32, #tpu.memory_space<vmem>>, vector<1x32xf32>
    %137 = vector.shape_cast %136 : vector<1x32xf32> to vector<32xf32>
    %cst_61 = arith.constant dense<0.000000e+00> : vector<8xf32>
    %138 = vector.multi_reduction <add>, %133, %cst_61 [1] : vector<8x32xf32> to vector<8xf32>
    %139 = vector.shape_cast %138 : vector<8xf32> to vector<8x1xf32>
    %cst_62 = arith.constant 3.200000e+01 : f32
    %140 = vector.broadcast %cst_62 : f32 to vector<8x1xf32>
    %141 = arith.divf %139, %140 : vector<8x1xf32>
    %142 = vector.broadcast %141 : vector<8x1xf32> to vector<8x32xf32>
    %143 = arith.subf %133, %142 : vector<8x32xf32>
    %144 = arith.mulf %143, %143 : vector<8x32xf32>
    %cst_63 = arith.constant dense<0.000000e+00> : vector<8xf32>
    %145 = vector.multi_reduction <add>, %144, %cst_63 [1] : vector<8x32xf32> to vector<8xf32>
    %146 = vector.shape_cast %145 : vector<8xf32> to vector<8x1xf32>
    %cst_64 = arith.constant 3.200000e+01 : f32
    %147 = vector.broadcast %cst_64 : f32 to vector<8x1xf32>
    %148 = arith.divf %146, %147 : vector<8x1xf32>
    %149 = vector.broadcast %141 : vector<8x1xf32> to vector<8x32xf32>
    %150 = arith.subf %133, %149 : vector<8x32xf32>
    %cst_65 = arith.constant 9.99999974E-6 : f32
    %151 = vector.broadcast %cst_65 : f32 to vector<8x1xf32>
    %152 = arith.addf %148, %151 : vector<8x1xf32>
    %153 = math.sqrt %152 : vector<8x1xf32>
    %154 = vector.broadcast %153 : vector<8x1xf32> to vector<8x32xf32>
    %155 = arith.divf %150, %154 : vector<8x32xf32>
    %156 = vector.shape_cast %135 : vector<32xf32> to vector<1x32xf32>
    %157 = vector.broadcast %156 : vector<1x32xf32> to vector<8x32xf32>
    %158 = arith.mulf %157, %155 : vector<8x32xf32>
    %159 = vector.shape_cast %137 : vector<32xf32> to vector<1x32xf32>
    %160 = vector.broadcast %159 : vector<1x32xf32> to vector<8x32xf32>
    %161 = arith.addf %158, %160 : vector<8x32xf32>
    %c0_66 = arith.constant 0 : index
    %c0_67 = arith.constant 0 : index
    %c0_68 = arith.constant 0 : index
    %162 = vector.load %arg16[%c0_66, %c0_67, %c0_68] : memref<1x8x32xf32, #tpu.memory_space<vmem>>, vector<1x8x32xf32>
    %163 = vector.shape_cast %162 : vector<1x8x32xf32> to vector<8x32xf32>
    %164 = vector.shape_cast %161 : vector<8x32xf32> to vector<1x8x32xf32>
    tpu.vector_store %arg16[%c0_66, %c0_67, %c0_68], %164 {strides = array<i32>} : memref<1x8x32xf32, #tpu.memory_space<vmem>>, vector<1x8x32xf32>,
    return
  }
  func.func @transform_0(%arg0: i32) -> (i32, i32, i32) {
    %c0_i32 = arith.constant 0 : i32
    %c0_i32_0 = arith.constant 0 : i32
    %c0_i32_1 = arith.constant 0 : i32
    return %arg0, %c0_i32, %c0_i32_0 : i32, i32, i32
  }
  func.func @transform_1(%arg0: i32) -> (i32, i32) {
    %c0_i32 = arith.constant 0 : i32
    %c0_i32_0 = arith.constant 0 : i32
    %c0_i32_1 = arith.constant 0 : i32
    return %c0_i32, %c0_i32_0 : i32, i32
  }
  func.func @transform_2(%arg0: i32) -> (i32, i32) {
    %c0_i32 = arith.constant 0 : i32
    %c0_i32_0 = arith.constant 0 : i32
    %c0_i32_1 = arith.constant 0 : i32
    return %c0_i32, %c0_i32_0 : i32, i32
  }
  func.func @transform_3(%arg0: i32) -> (i32, i32, i32) {
    %c0_i32 = arith.constant 0 : i32
    %c0_i32_0 = arith.constant 0 : i32
    %c0_i32_1 = arith.constant 0 : i32
    %c0_i32_2 = arith.constant 0 : i32
    return %c0_i32, %c0_i32_0, %c0_i32_1 : i32, i32, i32
  }
  func.func @transform_4(%arg0: i32) -> (i32, i32) {
    %c0_i32 = arith.constant 0 : i32
    %c0_i32_0 = arith.constant 0 : i32
    %c0_i32_1 = arith.constant 0 : i32
    return %c0_i32, %c0_i32_0 : i32, i32
  }
  func.func @transform_5(%arg0: i32) -> (i32, i32) {
    %c0_i32 = arith.constant 0 : i32
    %c0_i32_0 = arith.constant 0 : i32
    %c0_i32_1 = arith.constant 0 : i32
    return %c0_i32, %c0_i32_0 : i32, i32
  }
  func.func @transform_6(%arg0: i32) -> (i32, i32) {
    %c0_i32 = arith.constant 0 : i32
    %c0_i32_0 = arith.constant 0 : i32
    %c0_i32_1 = arith.constant 0 : i32
    return %c0_i32, %c0_i32_0 : i32, i32
  }
  func.func @transform_7(%arg0: i32) -> (i32, i32) {
    %c0_i32 = arith.constant 0 : i32
    %c0_i32_0 = arith.constant 0 : i32
    %c0_i32_1 = arith.constant 0 : i32
    return %c0_i32, %c0_i32_0 : i32, i32
  }
  func.func @transform_8(%arg0: i32) -> (i32, i32) {
    %c0_i32 = arith.constant 0 : i32
    %c0_i32_0 = arith.constant 0 : i32
    %c0_i32_1 = arith.constant 0 : i32
    return %c0_i32, %c0_i32_0 : i32, i32
  }
  func.func @transform_9(%arg0: i32) -> (i32, i32) {
    %c0_i32 = arith.constant 0 : i32
    %c0_i32_0 = arith.constant 0 : i32
    %c0_i32_1 = arith.constant 0 : i32
    return %c0_i32, %c0_i32_0 : i32, i32
  }
  func.func @transform_10(%arg0: i32) -> (i32, i32) {
    %c0_i32 = arith.constant 0 : i32
    %c0_i32_0 = arith.constant 0 : i32
    %c0_i32_1 = arith.constant 0 : i32
    return %c0_i32, %c0_i32_0 : i32, i32
  }
  func.func @transform_11(%arg0: i32) -> (i32, i32) {
    %c0_i32 = arith.constant 0 : i32
    %c0_i32_0 = arith.constant 0 : i32
    %c0_i32_1 = arith.constant 0 : i32
    return %c0_i32, %c0_i32_0 : i32, i32
  }
  func.func @transform_12(%arg0: i32) -> (i32, i32) {
    %c0_i32 = arith.constant 0 : i32
    %c0_i32_0 = arith.constant 0 : i32
    %c0_i32_1 = arith.constant 0 : i32
    return %c0_i32, %c0_i32_0 : i32, i32
  }
  func.func @transform_13(%arg0: i32) -> (i32, i32) {
    %c0_i32 = arith.constant 0 : i32
    %c0_i32_0 = arith.constant 0 : i32
    %c0_i32_1 = arith.constant 0 : i32
    return %c0_i32, %c0_i32_0 : i32, i32
  }
  func.func @transform_14(%arg0: i32) -> (i32, i32) {
    %c0_i32 = arith.constant 0 : i32
    %c0_i32_0 = arith.constant 0 : i32
    %c0_i32_1 = arith.constant 0 : i32
    return %c0_i32, %c0_i32_0 : i32, i32
  }
  func.func @transform_15(%arg0: i32) -> (i32, i32, i32) {
    %c0_i32 = arith.constant 0 : i32
    %c0_i32_0 = arith.constant 0 : i32
    %c0_i32_1 = arith.constant 0 : i32
    return %arg0, %c0_i32, %c0_i32_0 : i32, i32, i32
  }
}

module attributes {stable_mosaic.version = 11 : i64} {
  func.func @block_kernel(%arg0: i32, %arg1: memref<1x8x32xf32, #tpu.memory_space<vmem>>, %arg2: memref<32x64xf32, #tpu.memory_space<vmem>>, %arg3: memref<1x64xf32, #tpu.memory_space<vmem>>, %arg4: memref<2x32x128xf32, #tpu.memory_space<vmem>>, %arg5: memref<1x128xf32, #tpu.memory_space<vmem>>, %arg6: memref<64x32xf32, #tpu.memory_space<vmem>>, %arg7: memref<1x32xf32, #tpu.memory_space<vmem>>, %arg8: memref<1x32xf32, #tpu.memory_space<vmem>>, %arg9: memref<1x32xf32, #tpu.memory_space<vmem>>, %arg10: memref<32x64xf32, #tpu.memory_space<vmem>>, %arg11: memref<1x64xf32, #tpu.memory_space<vmem>>, %arg12: memref<64x32xf32, #tpu.memory_space<vmem>>, %arg13: memref<1x32xf32, #tpu.memory_space<vmem>>, %arg14: memref<1x32xf32, #tpu.memory_space<vmem>>, %arg15: memref<1x32xf32, #tpu.memory_space<vmem>>, %arg16: memref<1x8x32xf32, #tpu.memory_space<vmem>>) attributes {dimension_semantics = [#tpu.dimension_semantics<parallel>], iteration_bounds = array<i64: 2>, scalar_prefetch = 0 : i64, scratch_operands = 0 : i64, tpu.core_type = #tpu.core_type<tc>, window_params = [{transform_indices = @transform_0, window_bounds = array<i64: 1, 8, 32>}, {pipeline_mode = #tpu.pipeline_mode<synchronous>, transform_indices = @transform_1, window_bounds = array<i64: 32, 64>}, {pipeline_mode = #tpu.pipeline_mode<synchronous>, transform_indices = @transform_2, window_bounds = array<i64: 1, 64>}, {pipeline_mode = #tpu.pipeline_mode<synchronous>, transform_indices = @transform_3, window_bounds = array<i64: 2, 32, 128>}, {pipeline_mode = #tpu.pipeline_mode<synchronous>, transform_indices = @transform_4, window_bounds = array<i64: 1, 128>}, {pipeline_mode = #tpu.pipeline_mode<synchronous>, transform_indices = @transform_5, window_bounds = array<i64: 64, 32>}, {pipeline_mode = #tpu.pipeline_mode<synchronous>, transform_indices = @transform_6, window_bounds = array<i64: 1, 32>}, {pipeline_mode = #tpu.pipeline_mode<synchronous>, transform_indices = @transform_7, window_bounds = array<i64: 1, 32>}, {pipeline_mode = #tpu.pipeline_mode<synchronous>, transform_indices = @transform_8, window_bounds = array<i64: 1, 32>}, {pipeline_mode = #tpu.pipeline_mode<synchronous>, transform_indices = @transform_9, window_bounds = array<i64: 32, 64>}, {pipeline_mode = #tpu.pipeline_mode<synchronous>, transform_indices = @transform_10, window_bounds = array<i64: 1, 64>}, {pipeline_mode = #tpu.pipeline_mode<synchronous>, transform_indices = @transform_11, window_bounds = array<i64: 64, 32>}, {pipeline_mode = #tpu.pipeline_mode<synchronous>, transform_indices = @transform_12, window_bounds = array<i64: 1, 32>}, {pipeline_mode = #tpu.pipeline_mode<synchronous>, transform_indices = @transform_13, window_bounds = array<i64: 1, 32>}, {pipeline_mode = #tpu.pipeline_mode<synchronous>, transform_indices = @transform_14, window_bounds = array<i64: 1, 32>}, {transform_indices = @transform_15, window_bounds = array<i64: 1, 8, 32>}]} {
    %c0 = arith.constant 0 : index
    %c0_0 = arith.constant 0 : index
    %c0_1 = arith.constant 0 : index
    %0 = vector.load %arg1[%c0, %c0_0, %c0_1] : memref<1x8x32xf32, #tpu.memory_space<vmem>>, vector<1x8x32xf32>
    %1 = vector.shape_cast %0 : vector<1x8x32xf32> to vector<8x32xf32>
    %c0_2 = arith.constant 0 : index
    %c0_3 = arith.constant 0 : index
    %2 = vector.load %arg2[%c0_2, %c0_3] : memref<32x64xf32, #tpu.memory_space<vmem>>, vector<32x64xf32>
    %cst = arith.constant dense<0.000000e+00> : vector<8x64xf32>
    %3 = tpu.matmul %1, %2, %cst {dimension_numbers = #tpu.dot_dimension_numbers<[1], [0], [0], [1], [0, 0, 1, 1], [], []>} : vector<8x32xf32>, vector<32x64xf32>, vector<8x64xf32> -> vector<8x64xf32>
    %c0_4 = arith.constant 0 : index
    %c0_5 = arith.constant 0 : index
    %4 = vector.load %arg3[%c0_4, %c0_5] : memref<1x64xf32, #tpu.memory_space<vmem>>, vector<1x64xf32>
    %5 = vector.shape_cast %4 : vector<1x64xf32> to vector<64xf32>
    %6 = vector.shape_cast %5 : vector<64xf32> to vector<1x64xf32>
    %7 = vector.broadcast %6 : vector<1x64xf32> to vector<8x64xf32>
    %8 = arith.addf %3, %7 : vector<8x64xf32>
    %9 = tpu.iota {dimensions = array<i32: 0>} : vector<8x32xi32>
    %c1_i32 = arith.constant 1 : i32
    %10 = vector.broadcast %c1_i32 : i32 to vector<8x32xi32>
    %11 = arith.cmpi sge, %9, %10 : vector<8x32xi32>
    %c1_i32_6 = arith.constant 1 : i32
    %12 = tpu.dynamic_rotate %1 by %c1_i32_6 dim 0 : vector<8x32xf32>, i32 -> vector<8x32xf32>
    %cst_7 = arith.constant 0.000000e+00 : f32
    %13 = vector.broadcast %cst_7 : f32 to vector<8x32xf32>
    %14 = arith.select %11, %12, %13 : vector<8x32xi1>, vector<8x32xf32>
    %c0_8 = arith.constant 0 : index
    %c0_9 = arith.constant 0 : index
    %c0_10 = arith.constant 0 : index
    %15 = vector.load %arg4[%c0_8, %c0_9, %c0_10] : memref<2x32x128xf32, #tpu.memory_space<vmem>>, vector<1x32x128xf32>
    %16 = vector.shape_cast %15 : vector<1x32x128xf32> to vector<32x128xf32>
    %cst_11 = arith.constant dense<0.000000e+00> : vector<8x128xf32>
    %17 = tpu.matmul %14, %16, %cst_11 {dimension_numbers = #tpu.dot_dimension_numbers<[1], [0], [0], [1], [0, 0, 1, 1], [], []>} : vector<8x32xf32>, vector<32x128xf32>, vector<8x128xf32> -> vector<8x128xf32>
    %c1 = arith.constant 1 : index
    %c0_12 = arith.constant 0 : index
    %c0_13 = arith.constant 0 : index
    %18 = vector.load %arg4[%c1, %c0_12, %c0_13] : memref<2x32x128xf32, #tpu.memory_space<vmem>>, vector<1x32x128xf32>
    %19 = vector.shape_cast %18 : vector<1x32x128xf32> to vector<32x128xf32>
    %cst_14 = arith.constant dense<0.000000e+00> : vector<8x128xf32>
    %20 = tpu.matmul %1, %19, %cst_14 {dimension_numbers = #tpu.dot_dimension_numbers<[1], [0], [0], [1], [0, 0, 1, 1], [], []>} : vector<8x32xf32>, vector<32x128xf32>, vector<8x128xf32> -> vector<8x128xf32>
    %21 = arith.addf %17, %20 : vector<8x128xf32>
    %c0_15 = arith.constant 0 : index
    %c0_16 = arith.constant 0 : index
    %22 = vector.load %arg5[%c0_15, %c0_16] : memref<1x128xf32, #tpu.memory_space<vmem>>, vector<1x128xf32>
    %23 = vector.shape_cast %22 : vector<1x128xf32> to vector<128xf32>
    %24 = vector.shape_cast %23 : vector<128xf32> to vector<1x128xf32>
    %25 = vector.broadcast %24 : vector<1x128xf32> to vector<8x128xf32>
    %26 = arith.addf %21, %25 : vector<8x128xf32>
    %27 = vector.extract_strided_slice %26 {offsets = [0, 0], sizes = [8, 32], strides = [1, 1]} : vector<8x128xf32> to vector<8x32xf32>
    %28 = vector.extract_strided_slice %26 {offsets = [0, 32], sizes = [8, 32], strides = [1, 1]} : vector<8x128xf32> to vector<8x32xf32>
    %29 = vector.extract_strided_slice %26 {offsets = [0, 64], sizes = [8, 32], strides = [1, 1]} : vector<8x128xf32> to vector<8x32xf32>
    %30 = vector.extract_strided_slice %26 {offsets = [0, 96], sizes = [8, 32], strides = [1, 1]} : vector<8x128xf32> to vector<8x32xf32>
    %31 = vector.extract_strided_slice %8 {offsets = [0, 0], sizes = [8, 32], strides = [1, 1]} : vector<8x64xf32> to vector<8x32xf32>
    %32 = vector.extract_strided_slice %8 {offsets = [0, 32], sizes = [8, 32], strides = [1, 1]} : vector<8x64xf32> to vector<8x32xf32>
    %c0_17 = arith.constant 0 : index
    %c0_18 = arith.constant 0 : index
    %33 = vector.load %arg6[%c0_17, %c0_18] : memref<64x32xf32, #tpu.memory_space<vmem>>, vector<64x32xf32>
    %34 = vector.extract_strided_slice %33 {offsets = [0, 0], sizes = [32, 32], strides = [1, 1]} : vector<64x32xf32> to vector<32x32xf32>
    %35 = vector.extract_strided_slice %33 {offsets = [32, 0], sizes = [32, 32], strides = [1, 1]} : vector<64x32xf32> to vector<32x32xf32>
    %36 = tpu.iota {dimensions = array<i32: 0>} : vector<8x8xi32>
    %37 = tpu.iota {dimensions = array<i32: 1>} : vector<8x8xi32>
    %38 = arith.cmpi sge, %36, %37 : vector<8x8xi32>
    %cst_19 = arith.constant 0.000000e+00 : f32
    %39 = vector.broadcast %cst_19 : f32 to vector<8x32xf32>
    %cst_20 = arith.constant dense<0.000000e+00> : vector<8x8xf32>
    %40 = tpu.matmul %27, %29, %cst_20 {dimension_numbers = #tpu.dot_dimension_numbers<[1], [1], [0], [0], [0, 0, 1, 0], [], []>} : vector<8x32xf32>, vector<8x32xf32>, vector<8x8xf32> -> vector<8x8xf32>
    %cst_21 = arith.constant -1.000000e+09 : f32
    %41 = vector.broadcast %cst_21 : f32 to vector<8x8xf32>
    %42 = arith.select %38, %40, %41 : vector<8x8xi1>, vector<8x8xf32>
    %cst_22 = arith.constant dense<0xFF800000> : vector<8xf32>
    %43 = vector.multi_reduction <maximumf>, %42, %cst_22 [1] : vector<8x8xf32> to vector<8xf32>
    %44 = vector.shape_cast %43 : vector<8xf32> to vector<8x1xf32>
    %45 = vector.broadcast %44 : vector<8x1xf32> to vector<8x8xf32>
    %46 = arith.subf %42, %45 : vector<8x8xf32>
    %47 = math.exp %46 : vector<8x8xf32>
    %cst_23 = arith.constant dense<0.000000e+00> : vector<8xf32>
    %48 = vector.multi_reduction <add>, %47, %cst_23 [1] : vector<8x8xf32> to vector<8xf32>
    %49 = vector.shape_cast %48 : vector<8xf32> to vector<8x1xf32>
    %cst_24 = arith.constant dense<0.000000e+00> : vector<8x32xf32>
    %50 = tpu.matmul %47, %31, %cst_24 {dimension_numbers = #tpu.dot_dimension_numbers<[1], [0], [0], [1], [0, 0, 1, 1], [], []>} : vector<8x8xf32>, vector<8x32xf32>, vector<8x32xf32> -> vector<8x32xf32>
    %51 = tpu.reciprocal %49 {approx = true} : vector<8x1xf32> -> vector<8x1xf32>
    %52 = vector.broadcast %51 : vector<8x1xf32> to vector<8x32xf32>
    %53 = arith.mulf %50, %52 : vector<8x32xf32>
    %cst_25 = arith.constant dense<0.000000e+00> : vector<8x32xf32>
    %54 = tpu.matmul %53, %34, %cst_25 {dimension_numbers = #tpu.dot_dimension_numbers<[1], [0], [0], [1], [0, 0, 1, 1], [], []>} : vector<8x32xf32>, vector<32x32xf32>, vector<8x32xf32> -> vector<8x32xf32>
    %55 = arith.addf %39, %54 : vector<8x32xf32>
    %cst_26 = arith.constant dense<0.000000e+00> : vector<8x8xf32>
    %56 = tpu.matmul %28, %30, %cst_26 {dimension_numbers = #tpu.dot_dimension_numbers<[1], [1], [0], [0], [0, 0, 1, 0], [], []>} : vector<8x32xf32>, vector<8x32xf32>, vector<8x8xf32> -> vector<8x8xf32>
    %cst_27 = arith.constant -1.000000e+09 : f32
    %57 = vector.broadcast %cst_27 : f32 to vector<8x8xf32>
    %58 = arith.select %38, %56, %57 : vector<8x8xi1>, vector<8x8xf32>
    %cst_28 = arith.constant dense<0xFF800000> : vector<8xf32>
    %59 = vector.multi_reduction <maximumf>, %58, %cst_28 [1] : vector<8x8xf32> to vector<8xf32>
    %60 = vector.shape_cast %59 : vector<8xf32> to vector<8x1xf32>
    %61 = vector.broadcast %60 : vector<8x1xf32> to vector<8x8xf32>
    %62 = arith.subf %58, %61 : vector<8x8xf32>
    %63 = math.exp %62 : vector<8x8xf32>
    %cst_29 = arith.constant dense<0.000000e+00> : vector<8xf32>
    %64 = vector.multi_reduction <add>, %63, %cst_29 [1] : vector<8x8xf32> to vector<8xf32>
    %65 = vector.shape_cast %64 : vector<8xf32> to vector<8x1xf32>
    %cst_30 = arith.constant dense<0.000000e+00> : vector<8x32xf32>
    %66 = tpu.matmul %63, %32, %cst_30 {dimension_numbers = #tpu.dot_dimension_numbers<[1], [0], [0], [1], [0, 0, 1, 1], [], []>} : vector<8x8xf32>, vector<8x32xf32>, vector<8x32xf32> -> vector<8x32xf32>
    %67 = tpu.reciprocal %65 {approx = true} : vector<8x1xf32> -> vector<8x1xf32>
    %68 = vector.broadcast %67 : vector<8x1xf32> to vector<8x32xf32>
    %69 = arith.mulf %66, %68 : vector<8x32xf32>
    %cst_31 = arith.constant dense<0.000000e+00> : vector<8x32xf32>
    %70 = tpu.matmul %69, %35, %cst_31 {dimension_numbers = #tpu.dot_dimension_numbers<[1], [0], [0], [1], [0, 0, 1, 1], [], []>} : vector<8x32xf32>, vector<32x32xf32>, vector<8x32xf32> -> vector<8x32xf32>
    %71 = arith.addf %55, %70 : vector<8x32xf32>
    %c0_32 = arith.constant 0 : index
    %c0_33 = arith.constant 0 : index
    %72 = vector.load %arg7[%c0_32, %c0_33] : memref<1x32xf32, #tpu.memory_space<vmem>>, vector<1x32xf32>
    %73 = vector.shape_cast %72 : vector<1x32xf32> to vector<32xf32>
    %74 = vector.shape_cast %73 : vector<32xf32> to vector<1x32xf32>
    %75 = vector.broadcast %74 : vector<1x32xf32> to vector<8x32xf32>
    %76 = arith.addf %71, %75 : vector<8x32xf32>
    %77 = arith.addf %1, %76 : vector<8x32xf32>
    %c0_34 = arith.constant 0 : index
    %c0_35 = arith.constant 0 : index
    %78 = vector.load %arg8[%c0_34, %c0_35] : memref<1x32xf32, #tpu.memory_space<vmem>>, vector<1x32xf32>
    %79 = vector.shape_cast %78 : vector<1x32xf32> to vector<32xf32>
    %c0_36 = arith.constant 0 : index
    %c0_37 = arith.constant 0 : index
    %80 = vector.load %arg9[%c0_36, %c0_37] : memref<1x32xf32, #tpu.memory_space<vmem>>, vector<1x32xf32>
    %81 = vector.shape_cast %80 : vector<1x32xf32> to vector<32xf32>
    %cst_38 = arith.constant dense<0.000000e+00> : vector<8xf32>
    %82 = vector.multi_reduction <add>, %77, %cst_38 [1] : vector<8x32xf32> to vector<8xf32>
    %83 = vector.shape_cast %82 : vector<8xf32> to vector<8x1xf32>
    %cst_39 = arith.constant 3.200000e+01 : f32
    %84 = vector.broadcast %cst_39 : f32 to vector<8x1xf32>
    %85 = arith.divf %83, %84 : vector<8x1xf32>
    %86 = vector.broadcast %85 : vector<8x1xf32> to vector<8x32xf32>
    %87 = arith.subf %77, %86 : vector<8x32xf32>
    %88 = arith.mulf %87, %87 : vector<8x32xf32>
    %cst_40 = arith.constant dense<0.000000e+00> : vector<8xf32>
    %89 = vector.multi_reduction <add>, %88, %cst_40 [1] : vector<8x32xf32> to vector<8xf32>
    %90 = vector.shape_cast %89 : vector<8xf32> to vector<8x1xf32>
    %cst_41 = arith.constant 3.200000e+01 : f32
    %91 = vector.broadcast %cst_41 : f32 to vector<8x1xf32>
    %92 = arith.divf %90, %91 : vector<8x1xf32>
    %93 = vector.broadcast %85 : vector<8x1xf32> to vector<8x32xf32>
    %94 = arith.subf %77, %93 : vector<8x32xf32>
    %cst_42 = arith.constant 9.99999974E-6 : f32
    %95 = vector.broadcast %cst_42 : f32 to vector<8x1xf32>
    %96 = arith.addf %92, %95 : vector<8x1xf32>
    %97 = math.sqrt %96 : vector<8x1xf32>
    %98 = vector.broadcast %97 : vector<8x1xf32> to vector<8x32xf32>
    %99 = arith.divf %94, %98 : vector<8x32xf32>
    %100 = vector.shape_cast %79 : vector<32xf32> to vector<1x32xf32>
    %101 = vector.broadcast %100 : vector<1x32xf32> to vector<8x32xf32>
    %102 = arith.mulf %101, %99 : vector<8x32xf32>
    %103 = vector.shape_cast %81 : vector<32xf32> to vector<1x32xf32>
    %104 = vector.broadcast %103 : vector<1x32xf32> to vector<8x32xf32>
    %105 = arith.addf %102, %104 : vector<8x32xf32>
    %c0_43 = arith.constant 0 : index
    %c0_44 = arith.constant 0 : index
    %106 = vector.load %arg10[%c0_43, %c0_44] : memref<32x64xf32, #tpu.memory_space<vmem>>, vector<32x64xf32>
    %cst_45 = arith.constant dense<0.000000e+00> : vector<8x64xf32>
    %107 = tpu.matmul %105, %106, %cst_45 {dimension_numbers = #tpu.dot_dimension_numbers<[1], [0], [0], [1], [0, 0, 1, 1], [], []>} : vector<8x32xf32>, vector<32x64xf32>, vector<8x64xf32> -> vector<8x64xf32>
    %c0_46 = arith.constant 0 : index
    %c0_47 = arith.constant 0 : index
    %108 = vector.load %arg11[%c0_46, %c0_47] : memref<1x64xf32, #tpu.memory_space<vmem>>, vector<1x64xf32>
    %109 = vector.shape_cast %108 : vector<1x64xf32> to vector<64xf32>
    %110 = vector.shape_cast %109 : vector<64xf32> to vector<1x64xf32>
    %111 = vector.broadcast %110 : vector<1x64xf32> to vector<8x64xf32>
    %112 = arith.addf %107, %111 : vector<8x64xf32>
    %cst_48 = arith.constant 5.000000e-01 : f32
    %113 = vector.broadcast %cst_48 : f32 to vector<8x64xf32>
    %114 = arith.mulf %113, %112 : vector<8x64xf32>
    %115 = arith.mulf %112, %112 : vector<8x64xf32>
    %116 = arith.mulf %112, %115 : vector<8x64xf32>
    %cst_49 = arith.constant 4.471500e-02 : f32
    %117 = vector.broadcast %cst_49 : f32 to vector<8x64xf32>
    %118 = arith.mulf %117, %116 : vector<8x64xf32>
    %119 = arith.addf %112, %118 : vector<8x64xf32>
    %cst_50 = arith.constant 0.797884583 : f32
    %120 = vector.broadcast %cst_50 : f32 to vector<8x64xf32>
    %121 = arith.mulf %120, %119 : vector<8x64xf32>
    %122 = math.tanh %121 : vector<8x64xf32>
    %cst_51 = arith.constant 1.000000e+00 : f32
    %123 = vector.broadcast %cst_51 : f32 to vector<8x64xf32>
    %124 = arith.addf %123, %122 : vector<8x64xf32>
    %125 = arith.mulf %114, %124 : vector<8x64xf32>
    %c0_52 = arith.constant 0 : index
    %c0_53 = arith.constant 0 : index
    %126 = vector.load %arg12[%c0_52, %c0_53] : memref<64x32xf32, #tpu.memory_space<vmem>>, vector<64x32xf32>
    %cst_54 = arith.constant dense<0.000000e+00> : vector<8x32xf32>
    %127 = tpu.matmul %125, %126, %cst_54 {dimension_numbers = #tpu.dot_dimension_numbers<[1], [0], [0], [1], [0, 0, 1, 1], [], []>} : vector<8x64xf32>, vector<64x32xf32>, vector<8x32xf32> -> vector<8x32xf32>
    %c0_55 = arith.constant 0 : index
    %c0_56 = arith.constant 0 : index
    %128 = vector.load %arg13[%c0_55, %c0_56] : memref<1x32xf32, #tpu.memory_space<vmem>>, vector<1x32xf32>
    %129 = vector.shape_cast %128 : vector<1x32xf32> to vector<32xf32>
    %130 = vector.shape_cast %129 : vector<32xf32> to vector<1x32xf32>
    %131 = vector.broadcast %130 : vector<1x32xf32> to vector<8x32xf32>
    %132 = arith.addf %127, %131 : vector<8x32xf32>
    %133 = arith.addf %105, %132 : vector<8x32xf32>
    %c0_57 = arith.constant 0 : index
    %c0_58 = arith.constant 0 : index
    %134 = vector.load %arg14[%c0_57, %c0_58] : memref<1x32xf32, #tpu.memory_space<vmem>>, vector<1x32xf32>
    %135 = vector.shape_cast %134 : vector<1x32xf32> to vector<32xf32>
    %c0_59 = arith.constant 0 : index
    %c0_60 = arith.constant 0 : index
    %136 = vector.load %arg15[%c0_59, %c0_60] : memref<1x32xf32, #tpu.memory_space<vmem>>, vector<1x32xf32>
    %137 = vector.shape_cast %136 : vector<1x32xf32> to vector<32xf32>
    %cst_61 = arith.constant dense<0.000000e+00> : vector<8xf32>
    %138 = vector.multi_reduction <add>, %133, %cst_61 [1] : vector<8x32xf32> to vector<8xf32>
    %139 = vector.shape_cast %138 : vector<8xf32> to vector<8x1xf32>
    %cst_62 = arith.constant 3.200000e+01 : f32
    %140 = vector.broadcast %cst_62 : f32 to vector<8x1xf32>
    %141 = arith.divf %139, %140 : vector<8x1xf32>
    %142 = vector.broadcast %141 : vector<8x1xf32> to vector<8x32xf32>
    %143 = arith.subf %133, %142 : vector<8x32xf32>
    %144 = arith.mulf %143, %143 : vector<8x32xf32>
    %cst_63 = arith.constant dense<0.000000e+00> : vector<8xf32>
    %145 = vector.multi_reduction <add>, %144, %cst_63 [1] : vector<8x32xf32> to vector<8xf32>
    %146 = vector.shape_cast %145 : vector<8xf32> to vector<8x1xf32>
    %cst_64 = arith.constant 3.200000e+01 : f32
    %147 = vector.broadcast %cst_64 : f32 to vector<8x1xf32>
    %148 = arith.divf %146, %147 : vector<8x1xf32>
    %149 = vector.broadcast %141 : vector<8x1xf32> to vector<8x32xf32>
    %150 = arith.subf %133, %149 : vector<8x32xf32>
    %cst_65 = arith.constant 9.99999974E-6 : f32
    %151 = vector.broadcast %cst_65 : f32 to vector<8x1xf32>
    %152 = arith.addf %148, %151 : vector<8x1xf32>
    %153 = math.sqrt %152 : vector<8x1xf32>
    %154 = vector.broadcast %153 : vector<8x1xf32> to vector<8x32xf32>
    %155 = arith.divf %150, %154 : vector<8x32xf32>
    %156 = vector.shape_cast %135 : vector<32xf32> to vector<1x32xf32>
    %157 = vector.broadcast %156 : vector<1x32xf32> to vector<8x32xf32>
    %158 = arith.mulf %157, %155 : vector<8x32xf32>
    %159 = vector.shape_cast %137 : vector<32xf32> to vector<1x32xf32>
    %160 = vector.broadcast %159 : vector<1x32xf32> to vector<8x32xf32>
    %161 = arith.addf %158, %160 : vector<8x32xf32>
    %c0_66 = arith.constant 0 : index
    %c0_67 = arith.constant 0 : index
    %c0_68 = arith.constant 0 : index
    %162 = vector.load %arg16[%c0_66, %c0_67, %c0_68] : memref<1x8x32xf32, #tpu.memory_space<vmem>>, vector<1x8x32xf32>
    %163 = vector.shape_cast %162 : vector<1x8x32xf32> to vector<8x32xf32>
    %164 = vector.shape_cast %161 : vector<8x32xf32> to vector<1x8x32xf32>
    tpu.vector_store %arg16[%c0_66, %c0_67, %c0_68], %164 {strides = array<i32>} : memref<1x8x32xf32, #tpu.memory_space<vmem>>, vector<1x8x32xf32>,
    return
  }
  func.func @transform_0(%arg0: i32) -> (i32, i32, i32) {
    %c0_i32 = arith.constant 0 : i32
    %c0_i32_0 = arith.constant 0 : i32
    %c0_i32_1 = arith.constant 0 : i32
    return %arg0, %c0_i32, %c0_i32_0 : i32, i32, i32
  }
  func.func @transform_1(%arg0: i32) -> (i32, i32) {
    %c0_i32 = arith.constant 0 : i32
    %c0_i32_0 = arith.constant 0 : i32
    %c0_i32_1 = arith.constant 0 : i32
    return %c0_i32, %c0_i32_0 : i32, i32
  }
  func.func @transform_2(%arg0: i32) -> (i32, i32) {
    %c0_i32 = arith.constant 0 : i32
    %c0_i32_0 = arith.constant 0 : i32
    %c0_i32_1 = arith.constant 0 : i32
    return %c0_i32, %c0_i32_0 : i32, i32
  }
  func.func @transform_3(%arg0: i32) -> (i32, i32, i32) {
    %c0_i32 = arith.constant 0 : i32
    %c0_i32_0 = arith.constant 0 : i32
    %c0_i32_1 = arith.constant 0 : i32
    %c0_i32_2 = arith.constant 0 : i32
    return %c0_i32, %c0_i32_0, %c0_i32_1 : i32, i32, i32
  }
  func.func @transform_4(%arg0: i32) -> (i32, i32) {
    %c0_i32 = arith.constant 0 : i32
    %c0_i32_0 = arith.constant 0 : i32
    %c0_i32_1 = arith.constant 0 : i32
    return %c0_i32, %c0_i32_0 : i32, i32
  }
  func.func @transform_5(%arg0: i32) -> (i32, i32) {
    %c0_i32 = arith.constant 0 : i32
    %c0_i32_0 = arith.constant 0 : i32
    %c0_i32_1 = arith.constant 0 : i32
    return %c0_i32, %c0_i32_0 : i32, i32
  }
  func.func @transform_6(%arg0: i32) -> (i32, i32) {
    %c0_i32 = arith.constant 0 : i32
    %c0_i32_0 = arith.constant 0 : i32
    %c0_i32_1 = arith.constant 0 : i32
    return %c0_i32, %c0_i32_0 : i32, i32
  }
  func.func @transform_7(%arg0: i32) -> (i32, i32) {
    %c0_i32 = arith.constant 0 : i32
    %c0_i32_0 = arith.constant 0 : i32
    %c0_i32_1 = arith.constant 0 : i32
    return %c0_i32, %c0_i32_0 : i32, i32
  }
  func.func @transform_8(%arg0: i32) -> (i32, i32) {
    %c0_i32 = arith.constant 0 : i32
    %c0_i32_0 = arith.constant 0 : i32
    %c0_i32_1 = arith.constant 0 : i32
    return %c0_i32, %c0_i32_0 : i32, i32
  }
  func.func @transform_9(%arg0: i32) -> (i32, i32) {
    %c0_i32 = arith.constant 0 : i32
    %c0_i32_0 = arith.constant 0 : i32
    %c0_i32_1 = arith.constant 0 : i32
    return %c0_i32, %c0_i32_0 : i32, i32
  }
  func.func @transform_10(%arg0: i32) -> (i32, i32) {
    %c0_i32 = arith.constant 0 : i32
    %c0_i32_0 = arith.constant 0 : i32
    %c0_i32_1 = arith.constant 0 : i32
    return %c0_i32, %c0_i32_0 : i32, i32
  }
  func.func @transform_11(%arg0: i32) -> (i32, i32) {
    %c0_i32 = arith.constant 0 : i32
    %c0_i32_0 = arith.constant 0 : i32
    %c0_i32_1 = arith.constant 0 : i32
    return %c0_i32, %c0_i32_0 : i32, i32
  }
  func.func @transform_12(%arg0: i32) -> (i32, i32) {
    %c0_i32 = arith.constant 0 : i32
    %c0_i32_0 = arith.constant 0 : i32
    %c0_i32_1 = arith.constant 0 : i32
    return %c0_i32, %c0_i32_0 : i32, i32
  }
  func.func @transform_13(%arg0: i32) -> (i32, i32) {
    %c0_i32 = arith.constant 0 : i32
    %c0_i32_0 = arith.constant 0 : i32
    %c0_i32_1 = arith.constant 0 : i32
    return %c0_i32, %c0_i32_0 : i32, i32
  }
  func.func @transform_14(%arg0: i32) -> (i32, i32) {
    %c0_i32 = arith.constant 0 : i32
    %c0_i32_0 = arith.constant 0 : i32
    %c0_i32_1 = arith.constant 0 : i32
    return %c0_i32, %c0_i32_0 : i32, i32
  }
  func.func @transform_15(%arg0: i32) -> (i32, i32, i32) {
    %c0_i32 = arith.constant 0 : i32
    %c0_i32_0 = arith.constant 0 : i32
    %c0_i32_1 = arith.constant 0 : i32
    return %arg0, %c0_i32, %c0_i32_0 : i32, i32, i32
  }
}

</mosaic_0001>

<bundles_post_ra>
// kernel: tpu_custom_call.1
= control target key start
LH: loop header
LB: loop body
LE: loop exit
PB: predicated region body
PF: predicated region fallthrough
CT: control target
= control target key end

     0   :  { %s2309_s0 = inlined_call_operand.vmem [shape: f32[2,8,32], index: 0, kind: input, shape index: {}]   ;;  %s2310_s1 = inlined_call_operand.vmem [shape: f32[32,64], index: 1, kind: input, shape index: {}]   ;;  %s2311_s2 = inlined_call_operand.vmem [shape: f32[1,64], index: 2, kind: input, shape index: {}]   ;;  %s2312_s3 = inlined_call_operand.vmem [shape: f32[2,32,128], index: 3, kind: input, shape index: {}]   ;;  %s2313_s4 = inlined_call_operand.vmem [shape: f32[1,128], index: 4, kind: input, shape index: {}]   ;;  %s2314_s5 = inlined_call_operand.vmem [shape: f32[64,32], index: 5, kind: input, shape index: {}]   ;;  %s2315_s6 = inlined_call_operand.vmem [shape: f32[1,32], index: 6, kind: input, shape index: {}]   ;;  %s2316_s7 = inlined_call_operand.vmem [shape: f32[1,32], index: 7, kind: input, shape index: {}]   ;;  %s2317_s8 = inlined_call_operand.vmem [shape: f32[1,32], index: 8, kind: input, shape index: {}]   ;;  %s2318_s9 = inlined_call_operand.vmem [shape: f32[32,64], index: 9, kind: input, shape index: {}]   ;;  %s2319_s10 = inlined_call_operand.vmem [shape: f32[1,64], index: 10, kind: input, shape index: {}]   ;;  %s2320_s11 = inlined_call_operand.vmem [shape: f32[64,32], index: 11, kind: input, shape index: {}]   ;;  %s2321_s12 = inlined_call_operand.vmem [shape: f32[1,32], index: 12, kind: input, shape index: {}]   ;;  %s2322_s13 = inlined_call_operand.vmem [shape: f32[1,32], index: 13, kind: input, shape index: {}]   ;;  %s2323_s14 = inlined_call_operand.vmem [shape: f32[1,32], index: 14, kind: input, shape index: {}]   ;;  %s2324_s15 = inlined_call_operand.hbm [shape: f32[2,8,32], index: 15, kind: output, shape index: {}]  }
   0x1   :  { %2328 = sst [smem:[#allocation8_spill]] %s2309_s0 }
   0x2   :  { %2329 = sst [smem:[#allocation9_spill]] %s2310_s1 }
   0x3   :  { %2330 = sst [smem:[#allocation10_spill]] %s2311_s2 }
   0x4   :  { %20 = vsyncpa [#allocation3], 0 }
   0x5   :  { %22 = vsyncpa [#allocation3 + $0x1], 0  ;;  %s2017_s18 = smov 0   ;;  %s2019_s19 = smov 0  }
   0x6   :  { %s2021_s20 = smov 0   ;;  %s2023_s21 = smov 0  }
   0x7 LB: > { %2331 = sst [smem:[#allocation5_spill]] %s1924_s20  ;;  %s2038_s22 = sadd.s32 4294967295, %s1928_s21   ;;  %s1928_s21 = sphi %s2023_s21, %s2339_s21   ;;  %s1924_s20 = sphi %s2021_s20, %s2341_s20   ;;  %s1920_s19 = sphi %s2019_s19, %s2343_s19   ;;  %s1916_s18 = sphi %s2017_s18, %s2342_s18  }
   0x8   : > { %s1567_s23 = sadd.s32 4294967294, %s1928_s21   ;;  %s2042_s24 = sadd.s32 1, %s1928_s21  }
   0x9   : > { %2332 = sst [smem:[#allocation6_spill]] %s2042_s24  ;;  %s355_s25 = sadd.s32 1, %s1924_s20 }
   0xa   : > { %s352_s26 = ssub.s32 %s1928_s21, %s2042_s24  ;;  %p365_p0 = scmp.ne.s32.totalorder %s1924_s20, %s1920_s19 }
   0xb   : > { %p353_p1 = scmp.eq.s32.totalorder %s352_s26, 0  ;;  %p366_p2 = scmp.eq.s32.totalorder %s2038_s22, 1 }
   0xc   : > { %p371_p3 = scmp.ne.s32.totalorder %s1920_s19, %s1916_s18  ;;  %p372_p4 = scmp.eq.s32.totalorder %s1567_s23, 1 }
   0xd   : > { %s2053_s27 = scalar_select %p353_p1, %s1924_s20, %s355_s25  }
   0xe   : > { %p2055_p5 = por %p366_p2, %p365_p0  ;;  %p2059_p6 = por %p372_p4, %p371_p3 }
   0xf   : > { %2333 = sst [smem:[#allocation7_spill]] %s2053_s27  ;;  %p1570_p7 = scmp.ge.s32.totalorder %s1928_s21, 1 }
  0x10   : > { %p439_p8 = scmp.lt.s32.totalorder %s1928_s21, 3 }
  0x12   : > { %p440_p9 = pnand %p1570_p7, %p439_p8 }
  0x13   : > { %s2336_s1 = sld [smem:[#allocation9_spill]] (!%p440_p9)  ;;  %v1930_v3 = vmov (!%p440_p9), 0.0|0.0   ;;  %vm1931_vm0 = vmmov (!%p440_p9), 0   ;;  %v1932_v6 = vmov (!%p440_p9), 0.0   ;;  %p486_p10 = scmp.lt.s32.totalorder (!%p440_p9), %s2038_s22, 1  ;;  %v1575_v7 = vld [vmem:[%s2312_s3 + $0x20] sm:$0xff] (!%p440_p9)  ;;  %v576_v16 = vlaneseq (!%p440_p9) }
  0x14   : > { %443 = sbr.rel (%p440_p9) target bundleno = 2309 (0x905), region = 80  ;;  %1755 = vmatprep.subr.bf16.mxu0 (!%p440_p9), %v1930_v3  ;;  %1658 = vmatprep.mubr.msk.f32.mxu0 (!%p440_p9), %vm1931_vm0, %v1932_v6  ;;  %v1576_v8 = vld [vmem:[%s2312_s3 + $0x28] sm:$0xff] (!%p440_p9)  ;;  %v1577_v10 = vld [vmem:[%s2312_s3 + $0x30] sm:$0xff] (!%p440_p9)  ;;  %v1578_v12 = vld [vmem:[%s2312_s3 + $0x38] sm:$0xff] (!%p440_p9)  ;;  %s2337_s0 = sld [smem:[#allocation8_spill]] (!%p440_p9)  ;;  %vm502_vm1 = vcmask (!%p440_p9), 261120  }
  0x15   : > { %1761 = vmatprep.subr.bf16.mxu1 (!%p440_p9), %v1930_v3  ;;  %v1762_v9 = vpack.c.bf16 (!%p440_p9), %v1576_v8, %v1575_v7  ;;  %1669 = vmatprep.mubr.msk.f32.mxu1 (!%p440_p9), %vm1931_vm0, %v1932_v6  ;;  %v581_v13 = vld [vmem:[%s2312_s3] sm:$0xff] (!%p440_p9)  ;;  %v582_v14 = vld [vmem:[%s2312_s3 + $0x8] sm:$0xff] (!%p440_p9)  ;;  %v1765_v15 = vpack.c.bf16 (!%p440_p9), %v1578_v12, %v1577_v10  ;;  %v583_v19 = vld [vmem:[%s2312_s3 + $0x10] sm:$0xff] (!%p440_p9)  ;;  %v577_v21 = vshrl.u32 (!%p440_p9), %v576_v16, 7  ;;  %s2338_s2 = sld [smem:[#allocation10_spill]] (!%p440_p9)  ;;  %s1935_s30 = smov (!%p440_p9), 32  }
  0x16   : > { %v1768_v18 = vpack.c.bf16 (!%p440_p9), %v582_v14, %v581_v13  ;;  %v584_v20 = vld [vmem:[%s2312_s3 + $0x18] sm:$0xff] (!%p440_p9)  ;;  %v1581_v32 = vld [vmem:[%s2313_s4] ss:$0 sm:$0xff] (!%p440_p9)  ;;  %v750_v39 = vand.u32 (!%p440_p9), 127, %v576_v16  ;;  %vm830_vm4 = vcmask (!%p440_p9), 64512   ;;  %v742_v60 = vld [vmem:[%s2314_s5 + $0x8] sm:$0xff] (!%p440_p9) }
  0x17   : > { %1763 = vmatpush3.bf16.msra.mxu1 (!%p440_p9), %v1762_v9  ;;  %v1771_v23 = vpack.c.bf16 (!%p440_p9), %v584_v20, %v583_v19  ;;  %vm578_vm2 = vcmp.ge.s32.totalorder (!%p440_p9), %v577_v21, 1  ;;  %v741_v59 = vld [vmem:[%s2314_s5] sm:$0xff] (!%p440_p9)  ;;  %v746_v63 = vld [vmem:[%s2314_s5 + $0x28] sm:$0xff] (!%p440_p9)  ;;  %v748_v7 = vld [vmem:[%s2314_s5 + $0x38] sm:$0xff] (!%p440_p9)  ;;  %vm1382_vm7 = vcmask (!%p440_p9), 523264   ;;  %s483_s16 = sand.u32 (!%p440_p9), 1, %s1920_s19  }
  0x18   : > { %1764 = vmatprep.subr.bf16.mxu1 (!%p440_p9), %v1930_v3  ;;  %vm751_vm3 = vcmp.ge.s32.totalorder (!%p440_p9), %v577_v21, %v750_v39  ;;  %v1780_v61 = vpack.c.bf16 (!%p440_p9), %v742_v60, %v741_v59  ;;  %v745_v62 = vld [vmem:[%s2314_s5 + $0x20] sm:$0xff] (!%p440_p9)  ;;  %v1372_v59 = vld [vmem:[%s2320_s11 + $0x28] sm:$0xff] (!%p440_p9)  ;;  %s1571_s17 = sshll.u32 (!%p440_p9), %s483_s16, 3  ;;  %s1600_s25 = sshll.u32 (!%p440_p9), %s2038_s22, 7 }
  0x19   : > { %v491_v0 = vld [vmem:[%s2336_s1] sm:$0xff] (!%p440_p9)  ;;  %v492_v1 = vld [vmem:[%s2336_s1 + $0x8] sm:$0xff] (!%p440_p9)  ;;  %v493_v2 = vld [vmem:[%s2336_s1 + $0x10] sm:$0xff] (!%p440_p9) }
  0x1a   : > { %v1756_v4 = vpack.c.bf16 (!%p440_p9), %v492_v1, %v491_v0  ;;  %v494_v5 = vld [vmem:[%s2336_s1 + $0x18] sm:$0xff] (!%p440_p9)  ;;  %v743_v0 = vld [vmem:[%s2314_s5 + $0x10] sm:$0xff] (!%p440_p9)  ;;  %v1774_v1 = vpack.c.bf16 (!%p440_p9), %v746_v63, %v745_v62 }
  0x1b   : > { %v1759_v11 = vpack.c.bf16 %v494_v5, %v493_v2  ;;  %s487_s27 = scalar_select %p486_p10, %s2038_s22, 1  ;;  %1766 = vmatpush3.bf16.msra.mxu1 %v1765_v15  ;;  %v1573_v25 = vld [vmem:[%s2338_s2] ss:$0 sm:$0xff]  ;;  %v744_v2 = vld [vmem:[%s2314_s5 + $0x18] sm:$0xff]  ;;  %v747_v5 = vld [vmem:[%s2314_s5 + $0x30] sm:$0xff] }
  0x1c   : > { %1757 = vmatpush3.bf16.msra.mxu0 %v1756_v4  ;;  %1688 = vmatprep.subr.mxu1 %v1932_v6  ;;  %v1783_v4 = vpack.c.bf16 %v744_v2, %v743_v0  ;;  %v1777_v8 = vpack.c.bf16 %v748_v7, %v747_v5  ;;  %v1374_v62 = vld [vmem:[%s2320_s11 + $0x38] sm:$0xff]  ;;  %v1593_v0 = vld [vmem:[%s2319_s10] ss:$0 sm:$0xff]  ;;  %s2266_s2 = scalar_lea.hbm %s2324_s15, %s1600_s25  ;;  %s1936_s22 = smov [#allocation2]  }
  0x1d   : > { %1758 = vmatprep.subr.bf16.mxu0 %v1930_v3  ;;  %s1572_s20 = sshll.u32 %s487_s27, 3  ;;  %s1495_s27 = scalar_lea.sflag [#allocation3], %s483_s16 }
  0x1e   : > { %s489_s26 = scalar_lea.vmem %s2337_s0, %s1572_s20  ;;  %s1933_s20 = smov 96  }
  0x1f   : > { %v2108_v17 = vld [vmem:[%s489_s26] sm:$0xff]  ;;  %s1934_s26 = smov 64  }
  0x20   : > { %1760 = vmatpush3.bf16.msra.mxu0 %v1759_v11  ;;  %v579_v22 = vrot.slane %v2108_v17, 7  ;;  %1670 = vmatmul.mubr.msk.f32.vlgmr.msra.gmra.mrb[0].mxu1 %vm502_vm1, %v2108_v17 }
  0x21   : > { %1767 = vmatprep.subr.bf16.mxu0 %v1930_v3  ;;  %1690 = vmatprep.mubr.msk.f32.mxu1 %vm1931_vm0, %v1932_v6 }
  0x22   : > { %v580_v24 = vsel %vm578_vm2, %v579_v22, 0.0 }
  0x23   : > { %1659 = vmatmul.mubr.msk.f32.vlgmr.msra.gmra.mrb[0].mxu0 %vm502_vm1, %v2108_v17 }
  0x24   : > { %1769 = vmatpush3.bf16.msra.mxu0 %v1768_v18  ;;  %1680 = vmatprep.mubr.msk.f32.mxu0 %vm1931_vm0, %v1932_v6 }
  0x25   : > { %1770 = vmatprep.subr.bf16.mxu0 %v1930_v3 }
  0x28   : > { %1772 = vmatpush3.bf16.msra.mxu0 %v1771_v23  ;;  %v1590_v23 = vld [vmem:[%s2315_s6] ss:$0 sm:$0xff] }
  0x29   : > { %1683 = vmatprep.subr.mxu0 %v1932_v6 }
  0x2b   : > { %1681 = vmatmul.mubr.msk.f32.vlgmr.msra.gmra.mrb[2].mxu0 %vm502_vm1, %v580_v24 }
  0x2c   : > { %1685 = vmatprep.mubr.msk.f32.mxu0 %vm1931_vm0, %v1932_v6 }
  0xf3   : > { %v656_v29 = vpop.f32.mrb[0].mxu1 }
  0xf4   : > { %v1671_v30 = vpop.f32.mrb[1].mxu1 }
  0xf6   : > { %v572_v26 = vpop.f32.mrb[0].mxu0 }
  0xf7   : > { %v573_v27 = vadd.f32 %v1573_v25, %v572_v26  ;;  %v1660_v28 = vpop.f32.mrb[1].mxu0 }
  0xf9   : > { %1689 = vmatpush3.msra.mxu1 %v573_v27 }
  0xfa   : > { %1698 = vmatprep.subr.mxu1 %v1932_v6 }
  0xfe   : > { %v729_v31 = vpop.f32.mrb[2].mxu0 }
  0xff   : > { %v730_v33 = vadd.f32 %v729_v31, %v656_v29  ;;  %v1682_v34 = vpop.f32.mrb[3].mxu0 }
 0x100   : > { %v1275_v34 = vld [vmem:[%s2318_s9 + $0x8] sm:$0xff] }
 0x101   : > { %v740_v35 = vadd.f32 %v1581_v32, %v730_v33  ;;  %v1274_v33 = vld [vmem:[%s2318_s9] sm:$0xff] }
 0x103   : > { %915 = vrot.lane.b32.xlu1 %v740_v35, %s1933_s20  ;;  %753 = vrot.lane.b32.xlu0 %v740_v35, %s1934_s26 }
 0x107   : > { %917 = vrot.lane.b32.xlu0 %v740_v35, %s1935_s30 }
 0x175   : > { %v754_v36 = vpop.permute.xlu0 %753  ;;  %v916_v38 = vpop.permute.xlu1 %915 }
 0x176   : > { %1684 = vmatpush3.xpose.msk.msra.mxu0 %vm502_vm1, %v754_v36  ;;  %v1277_v36 = vld [vmem:[%s2318_s9 + $0x18] sm:$0xff] }
 0x177   : > { %1693 = vmatprep.subr.mxu0 %v1932_v6 }
 0x179   : > { %1686 = vmatmul.mubr.msk.f32.vlgmr.msra.gmra.mrb[4].mxu0 %vm502_vm1, %v740_v35  ;;  %v918_v37 = vpop.permute.xlu0 %917  ;;  %v1786_v35 = vpack.c.bf16 %v1275_v34, %v1274_v33  ;;  %v1597_v34 = vld [vmem:[%s2322_s13] ss:$0 sm:$0xff] }
 0x17a   : > { %1694 = vmatpush3.xpose.msk.msra.mxu0 %vm502_vm1, %v918_v37  ;;  %1695 = vmatprep.mubr.msk.f32.mxu0 %vm1931_vm0, %v1932_v6 }
 0x17b   : > { %1773 = vmatprep.subr.bf16.mxu0 %v1930_v3 }
 0x17d   : > { %1696 = vmatmul.mubr.msk.f32.vlgmr.msra.gmra.mrb[6].mxu0 %vm502_vm1, %v916_v38 }
 0x17e   : > { %1711 = vmatprep.mubr.msk.f32.mxu0 %vm1931_vm0, %v1932_v6  ;;  %1775 = vmatpush3.bf16.msra.mxu0 %v1774_v1 }
 0x17f   : > { %1776 = vmatprep.subr.bf16.mxu0 %v1930_v3 }
 0x182   : > { %1778 = vmatpush3.bf16.msra.mxu0 %v1777_v8 }
 0x183   : > { %1785 = vmatprep.subr.bf16.mxu0 %v1930_v3 }
 0x24c   : > { %v825_v40 = vpop.f32.mrb[4].mxu0 }
 0x24d   : > { %v829_v41 = vsel %vm751_vm3, %v825_v40, -1e+09  ;;  %v1687_v42 = vpop.f32.mrb[5].mxu0 }
 0x24e   : > { %v831_v43 = vsel %vm830_vm4, %v829_v41, -inf }
 0x24f   : > { %832 = vmax.xlane.f32.xlu1 %v831_v43 }
 0x250   : > { %v989_v44 = vpop.f32.mrb[6].mxu0 }
 0x251   : > { %v993_v45 = vsel %vm751_vm3, %v989_v44, -1e+09  ;;  %v1697_v46 = vpop.f32.mrb[7].mxu0 }
 0x252   : > { %v994_v47 = vsel %vm830_vm4, %v993_v45, -inf }
 0x253   : > { %995 = vmax.xlane.f32.xlu0 %v994_v47  ;;  %v1591_v47 = vld [vmem:[%s2316_s7] ss:$0 sm:$0xff] }
 0x269   : > { %1004 = vrot.lane.b32.xlu0 %v573_v27, %s1933_s20  ;;  %s485_s20 = scalar_lea.vmem [#allocation2], %s1571_s17  ;;  %s1870_s17 = sshll.u32 %s1936_s22, 4  ;;  %s1871_s17 = int_to_ptr.vmem [resolvable:$false] %s1870_s17 }
 0x26a   : > { %s1508_s26 = sshll.u32 %s485_s20, 4  ;;  %s1872_s24 = scalar_lea.vmem %s1871_s17, 256  ;;  %s2268_s26 = int_to_ptr.vmem [resolvable:$true] %s1508_s26 }
 0x26b   : > { %s1866_s1 = scalar_lea.vmem %s2268_s26, 128  ;;  %p1873_p0 = scmp.lt.s32.totalorder %s2268_s26, %s1871_s17 }
 0x26c   : > { %p1867_p11 = scmp.ne.s32.totalorder %s2268_s26, %s1866_s1  ;;  %p1874_p1 = scmp.lt.s32.totalorder %s1872_s24, %s1866_s1 }
 0x26e   : > { %p1868_p12 = pnand %p1867_p11, %p2055_p5  ;;  %p1875_p2 = por %p1874_p1, %p1873_p0 }
 0x270   : > { %p1869_p13 = pneg %p1868_p12 }
 0x272   : > { %p1876_p3 = pnand %p1875_p2, %p1869_p13 }
 0x2dc   : > { %v833_v48 = vpop.xlane.xlu1 %832 }
 0x2dd   : > { %v834_v49 = vsub.f32 %v829_v41, %v833_v48 }
 0x2df   : > { %v835_v50 = vmul.f32 1.442695, %v834_v49  ;;  %v1592_v49 = vld [vmem:[%s2317_s8] ss:$0 sm:$0xff] }
 0x2e0   : > { %v996_v51 = vpop.xlane.xlu0 %995 }
 0x2e1   : > { %1848 = vpow2.f32 %v835_v50  ;;  %v997_v52 = vsub.f32 %v993_v45, %v996_v51 }
 0x2e3   : > { %v998_v53 = vmul.f32 1.442695, %v997_v52  ;;  %v1367_v52 = vld [vmem:[%s2320_s11] sm:$0xff] }
 0x2e4   : > { %v1005_v55 = vpop.permute.xlu0 %1004 }
 0x2e5   : > { %1850 = vpow2.f32 %v998_v53  ;;  %v1368_v53 = vld [vmem:[%s2320_s11 + $0x8] sm:$0xff] }
 0x2eb   : > { %v1849_v54 = vpop.eup %1848 }
 0x2ec   : > { %1691 = vmatmul.mubr.msk.f32.vlgmr.msra.gmra.mrb[2].mxu1 %vm830_vm4, %v1849_v54  ;;  %v837_v56 = vsel %vm830_vm4, %v1849_v54, 0.0  ;;  %v1792_v54 = vpack.c.bf16 %v1368_v53, %v1367_v52 }
 0x2ed   : > { %1699 = vmatpush3.msra.mxu1 %v1005_v55  ;;  %838 = vadd.xlane.f32.xlu1 %v837_v56  ;;  %v1369_v55 = vld [vmem:[%s2320_s11 + $0x10] sm:$0xff]  ;;  %v1370_v56 = vld [vmem:[%s2320_s11 + $0x18] sm:$0xff] }
 0x2ee   : > { %1700 = vmatprep.mubr.msk.f32.mxu1 %vm1931_vm0, %v1932_v6  ;;  %1779 = vmatprep.subr.bf16.mxu1 %v1930_v3 }
 0x2ef   : > { %v1851_v57 = vpop.eup %1850 }
 0x2f0   : > { %1701 = vmatmul.mubr.msk.f32.vlgmr.msra.gmra.mrb[4].mxu1 %vm830_vm4, %v1851_v57  ;;  %v1000_v58 = vsel %vm830_vm4, %v1851_v57, 0.0  ;;  %v1795_v57 = vpack.c.bf16 %v1370_v56, %v1369_v55 }
 0x2f1   : > { %1001 = vadd.xlane.f32.xlu1 %v1000_v58  ;;  %1722 = vmatprep.mubr.msk.f32.mxu1 %vm1931_vm0, %v1932_v6  ;;  %v1371_v58 = vld [vmem:[%s2320_s11 + $0x20] sm:$0xff] }
 0x2f2   : > { %1781 = vmatpush3.bf16.msra.mxu1 %v1780_v61  ;;  %v1798_v60 = vpack.c.bf16 %v1372_v59, %v1371_v58  ;;  %v1373_v61 = vld [vmem:[%s2320_s11 + $0x30] sm:$0xff] }
 0x2f3   : > { %1782 = vmatprep.subr.bf16.mxu1 %v1930_v3  ;;  %v1801_v63 = vpack.c.bf16 %v1374_v62, %v1373_v61 }
 0x2f6   : > { %1784 = vmatpush3.bf16.msra.mxu1 %v1783_v4 }
 0x2f7   : > { %1791 = vmatprep.subr.bf16.mxu1 %v1930_v3 }
 0x37a   : > { %v839_v9 = vpop.xlane.xlu1 %838 }
 0x37b   : > { %1852 = vrcp.f32 %v839_v9 }
 0x37e   : > { %v1002_v10 = vpop.xlane.xlu1 %1001 }
 0x37f   : > { %1854 = vrcp.f32 %v1002_v10 }
 0x385   : > { %v1853_v11 = vpop.eup %1852 }
 0x389   : > { %v1855_v15 = vpop.eup %1854 }
 0x3bf   : > { %v909_v12 = vpop.f32.mrb[2].mxu1 }
 0x3c0   : > { %v914_v13 = vmul.f32 %v1853_v11, %v909_v12  ;;  %v1692_v14 = vpop.f32.mrb[3].mxu1 }
 0x3c1   : > { %v1595_v14 = vld [vmem:[%s2321_s12] ss:$0 sm:$0xff] }
 0x3c2   : > { %1723 = vmatmul.mubr.msk.f32.vlgmr.msra.gmra.mrb[6].mxu1 %vm502_vm1, %v914_v13 }
 0x3c3   : > { %v1076_v16 = vpop.f32.mrb[4].mxu1  ;;  %1752 = vmatprep.mubr.msk.f32.mxu1 %vm1931_vm0, %v1932_v6  ;;  %1793 = vmatpush3.bf16.msra.mxu1 %v1792_v54 }
 0x3c4   : > { %v1081_v18 = vmul.f32 %v1855_v15, %v1076_v16  ;;  %v1702_v19 = vpop.f32.mrb[5].mxu1  ;;  %1794 = vmatprep.subr.bf16.mxu1 %v1930_v3 }
 0x3c6   : > { %1712 = vmatmul.mubr.msk.f32.vlgmr.msra.gmra.mrb[8].mxu0 %vm502_vm1, %v1081_v18 }
 0x3c7   : > { %1733 = vmatprep.mubr.msk.f32.mxu0 %vm1931_vm0, %v1932_v6  ;;  %1787 = vmatpush3.bf16.msra.mxu0 %v1786_v35  ;;  %v1598_v35 = vld [vmem:[%s2323_s14] ss:$0 sm:$0xff] }
 0x3c8   : > { %1788 = vmatprep.subr.bf16.mxu0 %v1930_v3  ;;  %1796 = vmatpush3.bf16.msra.mxu1 %v1795_v57 }
 0x3c9   : > { %1797 = vmatprep.subr.bf16.mxu1 %v1930_v3 }
 0x3cc   : > { %1799 = vmatpush3.bf16.msra.mxu1 %v1798_v60 }
 0x3cd   : > { %1800 = vmatprep.subr.bf16.mxu1 %v1930_v3 }
 0x3d0   : > { %1802 = vmatpush3.bf16.msra.mxu1 %v1801_v63 }
 0x495   : > { %v1224_v20 = vpop.f32.mrb[6].mxu1 }
 0x496   : > { %v1724_v21 = vpop.f32.mrb[7].mxu1 }
 0x499   : > { %v1151_v22 = vpop.f32.mrb[8].mxu0 }
 0x49a   : > { %v1225_v24 = vadd.f32 %v1224_v20, %v1151_v22  ;;  %v1713_v25 = vpop.f32.mrb[9].mxu0 }
 0x49c   : > { %v1235_v26 = vadd.f32 %v1590_v23, %v1225_v24 }
 0x49e   : > { %v1236_v27 = vadd.f32 %v1235_v26, %v2108_v17  ;;  %v1276_v17 = vld [vmem:[%s2318_s9 + $0x10] sm:$0xff] }
 0x49f   : > { %v1789_v37 = vpack.c.bf16 %v1277_v36, %v1276_v17 }
 0x4a0   : > { %v1239_v28 = vsel %vm502_vm1, %v1236_v27, 0.0 }
 0x4a1   : > { %1240 = vadd.xlane.f32.xlu1 %v1239_v28  ;;  %1790 = vmatpush3.bf16.msra.mxu0 %v1789_v37 }
 0x52e   : > { %v1241_v29 = vpop.xlane.xlu1 %1240 }
 0x52f   : > { %v1243_v30 = vmul.f32 0.03125, %v1241_v29 }
 0x531   : > { %v1244_v31 = vsub.f32 %v1236_v27, %v1243_v30 }
 0x533   : > { %v1245_v32 = vmul.f32 %v1244_v31, %v1244_v31 }
 0x535   : > { %v1246_v6 = vsel %vm502_vm1, %v1245_v32, 0.0 }
 0x536   : > { %1247 = vadd.xlane.f32.xlu1 %v1246_v6 }
 0x5c3   : > { %v1248_v38 = vpop.xlane.xlu1 %1247 }
 0x5c4   : > { %v1249_v39 = vmul.f32 0.03125, %v1248_v38 }
 0x5c6   : > { %v1250_v40 = vadd.f32 1e-05, %v1249_v39 }
 0x5c8   : > { %1856 = vrsqrt.f32 %v1250_v40  ;;  %vm1253_vm5 = vcmp.eq.f32.partialorder %v1250_v40, inf  ;;  %v1256_v43 = vand.u32 2147483648, %v1250_v40  ;;  %vm1255_vm6 = vcmp.eq.f32.partialorder %v1250_v40, 0.0 }
 0x5d2   : > { %v1857_v41 = vpop.eup %1856 }
 0x5d3   : > { %v1252_v42 = vmul.f32 %v1857_v41, %v1250_v40 }
 0x5d5   : > { %v1254_v44 = vsel %vm1253_vm5, %v1250_v40, %v1252_v42 }
 0x5d6   : > { %v1257_v45 = vsel %vm1255_vm6, %v1256_v43, %v1254_v44 }
 0x5d7   : > { %1858 = vrcp.f32 %v1257_v45 }
 0x5e1   : > { %v1859_v46 = vpop.eup %1858 }
 0x5e2   : > { %v1259_v48 = vmul.f32 %v1859_v46, %v1244_v31 }
 0x5e4   : > { %v1266_v50 = vmul.f32 %v1591_v47, %v1259_v48 }
 0x5e6   : > { %v1273_v51 = vadd.f32 %v1592_v49, %v1266_v50 }
 0x5e8   : > { %1734 = vmatmul.mubr.msk.f32.vlgmr.msra.gmra.mrb[10].mxu0 %vm502_vm1, %v1273_v51 }
 0x6bb   : > { %v1354_v1 = vpop.f32.mrb[10].mxu0 }
 0x6bc   : > { %v1355_v2 = vadd.f32 %v1593_v0, %v1354_v1  ;;  %v1735_v4 = vpop.f32.mrb[11].mxu0 }
 0x6be   : > { %v1359_v5 = vmul.f32 %v1355_v2, %v1355_v2  ;;  %v1358_v11 = vmul.f32 0.5, %v1355_v2 }
 0x6c0   : > { %v1360_v7 = vmul.f32 %v1359_v5, %v1355_v2 }
 0x6c2   : > { %v1361_v3 = vmul.f32 0.044715, %v1360_v7 }
 0x6c4   : > { %v1362_v8 = vadd.f32 %v1361_v3, %v1355_v2 }
 0x6c6   : > { %v1363_v9 = vmul.f32 0.7978846, %v1362_v8 }
 0x6c8   : > { %1860 = vtanh.f32 %v1363_v9 }
 0x6d2   : > { %v1861_v10 = vpop.eup %1860 }
 0x6d3   : > { %v1365_v12 = vadd.f32 1.0, %v1861_v10 }
 0x6d5   : > { %v1366_v13 = vmul.f32 %v1365_v12, %v1358_v11 }
 0x6d7   : > { %1753 = vmatmul.mubr.msk.f32.vlgmr.msra.gmra.mrb[8].mxu1 %vm1382_vm7, %v1366_v13 }
 0x7aa   : > { %v1452_v15 = vpop.f32.mrb[8].mxu1 }
 0x7ab   : > { %v1453_v16 = vadd.f32 %v1595_v14, %v1452_v15  ;;  %v1754_v18 = vpop.f32.mrb[9].mxu1 }
 0x7ad   : > { %v1456_v19 = vadd.f32 %v1453_v16, %v1273_v51 }
 0x7af   : > { %v1459_v20 = vsel %vm502_vm1, %v1456_v19, 0.0 }
 0x7b0   : > { %1460 = vadd.xlane.f32.xlu1 %v1459_v20 }
 0x83d   : > { %v1461_v21 = vpop.xlane.xlu1 %1460 }
 0x83e   : > { %v1462_v22 = vmul.f32 0.03125, %v1461_v21 }
 0x840   : > { %v1463_v23 = vsub.f32 %v1456_v19, %v1462_v22 }
 0x842   : > { %v1464_v24 = vmul.f32 %v1463_v23, %v1463_v23 }
 0x844   : > { %v1465_v25 = vsel %vm502_vm1, %v1464_v24, 0.0 }
 0x845   : > { %1466 = vadd.xlane.f32.xlu1 %v1465_v25 }
 0x8d2   : > { %v1467_v26 = vpop.xlane.xlu1 %1466 }
 0x8d3   : > { %v1468_v27 = vmul.f32 0.03125, %v1467_v26 }
 0x8d5   : > { %v1469_v28 = vadd.f32 1e-05, %v1468_v27 }
 0x8d7   : > { %1862 = vrsqrt.f32 %v1469_v28  ;;  %vm1472_vm8 = vcmp.eq.f32.partialorder %v1469_v28, inf  ;;  %v1475_v31 = vand.u32 2147483648, %v1469_v28  ;;  %vm1474_vm9 = vcmp.eq.f32.partialorder %v1469_v28, 0.0 }
 0x8e1   : > { %v1863_v29 = vpop.eup %1862 }
 0x8e2   : > { %v1471_v30 = vmul.f32 %v1863_v29, %v1469_v28 }
 0x8e4   : > { %v1473_v32 = vsel %vm1472_vm8, %v1469_v28, %v1471_v30 }
 0x8e5   : > { %v1476_v6 = vsel %vm1474_vm9, %v1475_v31, %v1473_v32 }
 0x8e6   : > { %1864 = vrcp.f32 %v1476_v6 }
 0x8f0   : > { %v1865_v33 = vpop.eup %1864 }
 0x8f1   : > { %v1478_v17 = vmul.f32 %v1865_v33, %v1463_v23 }
 0x8f3   : > { %v1485_v36 = vmul.f32 %v1597_v34, %v1478_v17 }
 0x8f5   : > { %v1492_v37 = vadd.f32 %v1598_v35, %v1485_v36 }
 0x8f7   : > { %1493 = vst.msk [vmem:[%s485_s20] sm:$0xff] %vm502_vm1, %v1492_v37 }
 0x8f8   : > { %1879 = shalt.err (!%p1876_p3)
}
 0x8f9   : > { %s1880_s0 = scalar_lea.hbm %s2266_s2, 128  ;;  %s1884_s25 = scalar_lea.hbm %s2324_s15, 256 }
 0x8fa   : > { %p1881_p4 = scmp.ne.s32.totalorder %s2266_s2, %s1880_s0  ;;  %p1885_p9 = scmp.lt.u32.totalorder %s2266_s2, %s2324_s15 }
 0x8fb   : > { %p1886_p10 = scmp.lt.u32.totalorder %s1884_s25, %s1880_s0  ;;  %p1888_p12 = scmp.lt.u32.totalorder %s1880_s0, %s2266_s2 }
 0x8fc   : > { %p1882_p7 = pnand %p1881_p4, %p2055_p5 }
 0x8fd   : > { %p1887_p11 = por %p1886_p10, %p1885_p9 }
 0x8fe   : > { %p1883_p8 = pneg %p1882_p7 }
 0x8ff   : > { %p1889_p13 = por %p1888_p12, %p1887_p11 }
 0x901   : > { %p1890_p0 = pnand %p1889_p13, %p1883_p8 }
 0x903   : > { %1893 = shalt.err (!%p1890_p0)
}
 0x904   : > { %1803 = dma.vmem_to_hbm [thread:$0]  (%p2055_p5), %s2268_s26, 128, %s2266_s2, %s1495_s27  }
 0x905 PF: > { %p1809_p1 = scmp.ge.s32.totalorder %s1928_s21, 2  ;;  %s1520_s1 = sand.u32 1, %s1916_s18  }
 0x906   : > { %s1521_s22 = scalar_lea.sflag [#allocation3], %s1520_s1 }
 0x907   : > { %p1806_p2 = pnand %p1809_p1, %p2059_p6 }
 0x909   : > { %1911 = dma.done.wait (!%p1806_p2), %s1521_s22, 128  }
 0x90a   : > { %1913 = vsyncadd (!%p1806_p2), %s1521_s22, 4294967168  ;;  %s2339_s21 = sld [smem:[#allocation6_spill]]  ;;  %s2340_s17 = sld [smem:[#allocation5_spill]] }
 0x90b   : > { %s2341_s20 = sld [smem:[#allocation7_spill]]  ;;  %s2342_s18 = smov %s1920_s19 }
 0x910   : > { %p25_p3 = scmp.ge.s32.totalorder %s2339_s21, 4   ;;  %s2343_s19 = smov %s2340_s17 }
 0x912   :  { %27 = sbr.rel (!%p25_p3) target bundleno = 7 (0x7), region = 116 }
 0x919   :  { %1526 = vsyncpa [#allocation3], 1 }
 0x91a   :  { %1528 = vsyncpa [#allocation3 + $0x1], 1 }

// kernel: tpu_custom_call.1
= control target key start
LH: loop header
LB: loop body
LE: loop exit
PB: predicated region body
PF: predicated region fallthrough
CT: control target
= control target key end

     0   :  { %s2309_s0 = inlined_call_operand.vmem [shape: f32[2,8,32], index: 0, kind: input, shape index: {}]   ;;  %s2310_s1 = inlined_call_operand.vmem [shape: f32[32,64], index: 1, kind: input, shape index: {}]   ;;  %s2311_s2 = inlined_call_operand.vmem [shape: f32[1,64], index: 2, kind: input, shape index: {}]   ;;  %s2312_s3 = inlined_call_operand.vmem [shape: f32[2,32,128], index: 3, kind: input, shape index: {}]   ;;  %s2313_s4 = inlined_call_operand.vmem [shape: f32[1,128], index: 4, kind: input, shape index: {}]   ;;  %s2314_s5 = inlined_call_operand.vmem [shape: f32[64,32], index: 5, kind: input, shape index: {}]   ;;  %s2315_s6 = inlined_call_operand.vmem [shape: f32[1,32], index: 6, kind: input, shape index: {}]   ;;  %s2316_s7 = inlined_call_operand.vmem [shape: f32[1,32], index: 7, kind: input, shape index: {}]   ;;  %s2317_s8 = inlined_call_operand.vmem [shape: f32[1,32], index: 8, kind: input, shape index: {}]   ;;  %s2318_s9 = inlined_call_operand.vmem [shape: f32[32,64], index: 9, kind: input, shape index: {}]   ;;  %s2319_s10 = inlined_call_operand.vmem [shape: f32[1,64], index: 10, kind: input, shape index: {}]   ;;  %s2320_s11 = inlined_call_operand.vmem [shape: f32[64,32], index: 11, kind: input, shape index: {}]   ;;  %s2321_s12 = inlined_call_operand.vmem [shape: f32[1,32], index: 12, kind: input, shape index: {}]   ;;  %s2322_s13 = inlined_call_operand.vmem [shape: f32[1,32], index: 13, kind: input, shape index: {}]   ;;  %s2323_s14 = inlined_call_operand.vmem [shape: f32[1,32], index: 14, kind: input, shape index: {}]   ;;  %s2324_s15 = inlined_call_operand.hbm [shape: f32[2,8,32], index: 15, kind: output, shape index: {}]  }
   0x1   :  { %2328 = sst [smem:[#allocation8_spill]] %s2309_s0 }
   0x2   :  { %2329 = sst [smem:[#allocation9_spill]] %s2310_s1 }
   0x3   :  { %2330 = sst [smem:[#allocation10_spill]] %s2311_s2 }
   0x4   :  { %20 = vsyncpa [#allocation3], 0 }
   0x5   :  { %22 = vsyncpa [#allocation3 + $0x1], 0  ;;  %s2017_s18 = smov 0   ;;  %s2019_s19 = smov 0  }
   0x6   :  { %s2021_s20 = smov 0   ;;  %s2023_s21 = smov 0  }
   0x7 LB: > { %2331 = sst [smem:[#allocation5_spill]] %s1924_s20  ;;  %s2038_s22 = sadd.s32 4294967295, %s1928_s21   ;;  %s1928_s21 = sphi %s2023_s21, %s2339_s21   ;;  %s1924_s20 = sphi %s2021_s20, %s2341_s20   ;;  %s1920_s19 = sphi %s2019_s19, %s2343_s19   ;;  %s1916_s18 = sphi %s2017_s18, %s2342_s18  }
   0x8   : > { %s1567_s23 = sadd.s32 4294967294, %s1928_s21   ;;  %s2042_s24 = sadd.s32 1, %s1928_s21  }
   0x9   : > { %2332 = sst [smem:[#allocation6_spill]] %s2042_s24  ;;  %s355_s25 = sadd.s32 1, %s1924_s20 }
   0xa   : > { %s352_s26 = ssub.s32 %s1928_s21, %s2042_s24  ;;  %p365_p0 = scmp.ne.s32.totalorder %s1924_s20, %s1920_s19 }
   0xb   : > { %p353_p1 = scmp.eq.s32.totalorder %s352_s26, 0  ;;  %p366_p2 = scmp.eq.s32.totalorder %s2038_s22, 1 }
   0xc   : > { %p371_p3 = scmp.ne.s32.totalorder %s1920_s19, %s1916_s18  ;;  %p372_p4 = scmp.eq.s32.totalorder %s1567_s23, 1 }
   0xd   : > { %s2053_s27 = scalar_select %p353_p1, %s1924_s20, %s355_s25  }
   0xe   : > { %p2055_p5 = por %p366_p2, %p365_p0  ;;  %p2059_p6 = por %p372_p4, %p371_p3 }
   0xf   : > { %2333 = sst [smem:[#allocation7_spill]] %s2053_s27  ;;  %p1570_p7 = scmp.ge.s32.totalorder %s1928_s21, 1 }
  0x10   : > { %p439_p8 = scmp.lt.s32.totalorder %s1928_s21, 3 }
  0x12   : > { %p440_p9 = pnand %p1570_p7, %p439_p8 }
  0x13   : > { %s2336_s1 = sld [smem:[#allocation9_spill]] (!%p440_p9)  ;;  %v1930_v3 = vmov (!%p440_p9), 0.0|0.0   ;;  %vm1931_vm0 = vmmov (!%p440_p9), 0   ;;  %v1932_v6 = vmov (!%p440_p9), 0.0   ;;  %p486_p10 = scmp.lt.s32.totalorder (!%p440_p9), %s2038_s22, 1  ;;  %v1575_v7 = vld [vmem:[%s2312_s3 + $0x20] sm:$0xff] (!%p440_p9)  ;;  %v576_v16 = vlaneseq (!%p440_p9) }
  0x14   : > { %443 = sbr.rel (%p440_p9) target bundleno = 2309 (0x905), region = 80  ;;  %1755 = vmatprep.subr.bf16.mxu0 (!%p440_p9), %v1930_v3  ;;  %1658 = vmatprep.mubr.msk.f32.mxu0 (!%p440_p9), %vm1931_vm0, %v1932_v6  ;;  %v1576_v8 = vld [vmem:[%s2312_s3 + $0x28] sm:$0xff] (!%p440_p9)  ;;  %v1577_v10 = vld [vmem:[%s2312_s3 + $0x30] sm:$0xff] (!%p440_p9)  ;;  %v1578_v12 = vld [vmem:[%s2312_s3 + $0x38] sm:$0xff] (!%p440_p9)  ;;  %s2337_s0 = sld [smem:[#allocation8_spill]] (!%p440_p9)  ;;  %vm502_vm1 = vcmask (!%p440_p9), 261120  }
  0x15   : > { %1761 = vmatprep.subr.bf16.mxu1 (!%p440_p9), %v1930_v3  ;;  %v1762_v9 = vpack.c.bf16 (!%p440_p9), %v1576_v8, %v1575_v7  ;;  %1669 = vmatprep.mubr.msk.f32.mxu1 (!%p440_p9), %vm1931_vm0, %v1932_v6  ;;  %v581_v13 = vld [vmem:[%s2312_s3] sm:$0xff] (!%p440_p9)  ;;  %v582_v14 = vld [vmem:[%s2312_s3 + $0x8] sm:$0xff] (!%p440_p9)  ;;  %v1765_v15 = vpack.c.bf16 (!%p440_p9), %v1578_v12, %v1577_v10  ;;  %v583_v19 = vld [vmem:[%s2312_s3 + $0x10] sm:$0xff] (!%p440_p9)  ;;  %v577_v21 = vshrl.u32 (!%p440_p9), %v576_v16, 7  ;;  %s2338_s2 = sld [smem:[#allocation10_spill]] (!%p440_p9)  ;;  %s1935_s30 = smov (!%p440_p9), 32  }
  0x16   : > { %v1768_v18 = vpack.c.bf16 (!%p440_p9), %v582_v14, %v581_v13  ;;  %v584_v20 = vld [vmem:[%s2312_s3 + $0x18] sm:$0xff] (!%p440_p9)  ;;  %v1581_v32 = vld [vmem:[%s2313_s4] ss:$0 sm:$0xff] (!%p440_p9)  ;;  %v750_v39 = vand.u32 (!%p440_p9), 127, %v576_v16  ;;  %vm830_vm4 = vcmask (!%p440_p9), 64512   ;;  %v742_v60 = vld [vmem:[%s2314_s5 + $0x8] sm:$0xff] (!%p440_p9) }
  0x17   : > { %1763 = vmatpush3.bf16.msra.mxu1 (!%p440_p9), %v1762_v9  ;;  %v1771_v23 = vpack.c.bf16 (!%p440_p9), %v584_v20, %v583_v19  ;;  %vm578_vm2 = vcmp.ge.s32.totalorder (!%p440_p9), %v577_v21, 1  ;;  %v741_v59 = vld [vmem:[%s2314_s5] sm:$0xff] (!%p440_p9)  ;;  %v746_v63 = vld [vmem:[%s2314_s5 + $0x28] sm:$0xff] (!%p440_p9)  ;;  %v748_v7 = vld [vmem:[%s2314_s5 + $0x38] sm:$0xff] (!%p440_p9)  ;;  %vm1382_vm7 = vcmask (!%p440_p9), 523264   ;;  %s483_s16 = sand.u32 (!%p440_p9), 1, %s1920_s19  }
  0x18   : > { %1764 = vmatprep.subr.bf16.mxu1 (!%p440_p9), %v1930_v3  ;;  %vm751_vm3 = vcmp.ge.s32.totalorder (!%p440_p9), %v577_v21, %v750_v39  ;;  %v1780_v61 = vpack.c.bf16 (!%p440_p9), %v742_v60, %v741_v59  ;;  %v745_v62 = vld [vmem:[%s2314_s5 + $0x20] sm:$0xff] (!%p440_p9)  ;;  %v1372_v59 = vld [vmem:[%s2320_s11 + $0x28] sm:$0xff] (!%p440_p9)  ;;  %s1571_s17 = sshll.u32 (!%p440_p9), %s483_s16, 3  ;;  %s1600_s25 = sshll.u32 (!%p440_p9), %s2038_s22, 7 }
  0x19   : > { %v491_v0 = vld [vmem:[%s2336_s1] sm:$0xff] (!%p440_p9)  ;;  %v492_v1 = vld [vmem:[%s2336_s1 + $0x8] sm:$0xff] (!%p440_p9)  ;;  %v493_v2 = vld [vmem:[%s2336_s1 + $0x10] sm:$0xff] (!%p440_p9) }
  0x1a   : > { %v1756_v4 = vpack.c.bf16 (!%p440_p9), %v492_v1, %v491_v0  ;;  %v494_v5 = vld [vmem:[%s2336_s1 + $0x18] sm:$0xff] (!%p440_p9)  ;;  %v743_v0 = vld [vmem:[%s2314_s5 + $0x10] sm:$0xff] (!%p440_p9)  ;;  %v1774_v1 = vpack.c.bf16 (!%p440_p9), %v746_v63, %v745_v62 }
  0x1b   : > { %v1759_v11 = vpack.c.bf16 %v494_v5, %v493_v2  ;;  %s487_s27 = scalar_select %p486_p10, %s2038_s22, 1  ;;  %1766 = vmatpush3.bf16.msra.mxu1 %v1765_v15  ;;  %v1573_v25 = vld [vmem:[%s2338_s2] ss:$0 sm:$0xff]  ;;  %v744_v2 = vld [vmem:[%s2314_s5 + $0x18] sm:$0xff]  ;;  %v747_v5 = vld [vmem:[%s2314_s5 + $0x30] sm:$0xff] }
  0x1c   : > { %1757 = vmatpush3.bf16.msra.mxu0 %v1756_v4  ;;  %1688 = vmatprep.subr.mxu1 %v1932_v6  ;;  %v1783_v4 = vpack.c.bf16 %v744_v2, %v743_v0  ;;  %v1777_v8 = vpack.c.bf16 %v748_v7, %v747_v5  ;;  %v1374_v62 = vld [vmem:[%s2320_s11 + $0x38] sm:$0xff]  ;;  %v1593_v0 = vld [vmem:[%s2319_s10] ss:$0 sm:$0xff]  ;;  %s2266_s2 = scalar_lea.hbm %s2324_s15, %s1600_s25  ;;  %s1936_s22 = smov [#allocation2]  }
  0x1d   : > { %1758 = vmatprep.subr.bf16.mxu0 %v1930_v3  ;;  %s1572_s20 = sshll.u32 %s487_s27, 3  ;;  %s1495_s27 = scalar_lea.sflag [#allocation3], %s483_s16 }
  0x1e   : > { %s489_s26 = scalar_lea.vmem %s2337_s0, %s1572_s20  ;;  %s1933_s20 = smov 96  }
  0x1f   : > { %v2108_v17 = vld [vmem:[%s489_s26] sm:$0xff]  ;;  %s1934_s26 = smov 64  }
  0x20   : > { %1760 = vmatpush3.bf16.msra.mxu0 %v1759_v11  ;;  %v579_v22 = vrot.slane %v2108_v17, 7  ;;  %1670 = vmatmul.mubr.msk.f32.vlgmr.msra.gmra.mrb[0].mxu1 %vm502_vm1, %v2108_v17 }
  0x21   : > { %1767 = vmatprep.subr.bf16.mxu0 %v1930_v3  ;;  %1690 = vmatprep.mubr.msk.f32.mxu1 %vm1931_vm0, %v1932_v6 }
  0x22   : > { %v580_v24 = vsel %vm578_vm2, %v579_v22, 0.0 }
  0x23   : > { %1659 = vmatmul.mubr.msk.f32.vlgmr.msra.gmra.mrb[0].mxu0 %vm502_vm1, %v2108_v17 }
  0x24   : > { %1769 = vmatpush3.bf16.msra.mxu0 %v1768_v18  ;;  %1680 = vmatprep.mubr.msk.f32.mxu0 %vm1931_vm0, %v1932_v6 }
  0x25   : > { %1770 = vmatprep.subr.bf16.mxu0 %v1930_v3 }
  0x28   : > { %1772 = vmatpush3.bf16.msra.mxu0 %v1771_v23  ;;  %v1590_v23 = vld [vmem:[%s2315_s6] ss:$0 sm:$0xff] }
  0x29   : > { %1683 = vmatprep.subr.mxu0 %v1932_v6 }
  0x2b   : > { %1681 = vmatmul.mubr.msk.f32.vlgmr.msra.gmra.mrb[2].mxu0 %vm502_vm1, %v580_v24 }
  0x2c   : > { %1685 = vmatprep.mubr.msk.f32.mxu0 %vm1931_vm0, %v1932_v6 }
  0xf3   : > { %v656_v29 = vpop.f32.mrb[0].mxu1 }
  0xf4   : > { %v1671_v30 = vpop.f32.mrb[1].mxu1 }
  0xf6   : > { %v572_v26 = vpop.f32.mrb[0].mxu0 }
  0xf7   : > { %v573_v27 = vadd.f32 %v1573_v25, %v572_v26  ;;  %v1660_v28 = vpop.f32.mrb[1].mxu0 }
  0xf9   : > { %1689 = vmatpush3.msra.mxu1 %v573_v27 }
  0xfa   : > { %1698 = vmatprep.subr.mxu1 %v1932_v6 }
  0xfe   : > { %v729_v31 = vpop.f32.mrb[2].mxu0 }
  0xff   : > { %v730_v33 = vadd.f32 %v729_v31, %v656_v29  ;;  %v1682_v34 = vpop.f32.mrb[3].mxu0 }
 0x100   : > { %v1275_v34 = vld [vmem:[%s2318_s9 + $0x8] sm:$0xff] }
 0x101   : > { %v740_v35 = vadd.f32 %v1581_v32, %v730_v33  ;;  %v1274_v33 = vld [vmem:[%s2318_s9] sm:$0xff] }
 0x103   : > { %915 = vrot.lane.b32.xlu1 %v740_v35, %s1933_s20  ;;  %753 = vrot.lane.b32.xlu0 %v740_v35, %s1934_s26 }
 0x107   : > { %917 = vrot.lane.b32.xlu0 %v740_v35, %s1935_s30 }
 0x175   : > { %v754_v36 = vpop.permute.xlu0 %753  ;;  %v916_v38 = vpop.permute.xlu1 %915 }
 0x176   : > { %1684 = vmatpush3.xpose.msk.msra.mxu0 %vm502_vm1, %v754_v36  ;;  %v1277_v36 = vld [vmem:[%s2318_s9 + $0x18] sm:$0xff] }
 0x177   : > { %1693 = vmatprep.subr.mxu0 %v1932_v6 }
 0x179   : > { %1686 = vmatmul.mubr.msk.f32.vlgmr.msra.gmra.mrb[4].mxu0 %vm502_vm1, %v740_v35  ;;  %v918_v37 = vpop.permute.xlu0 %917  ;;  %v1786_v35 = vpack.c.bf16 %v1275_v34, %v1274_v33  ;;  %v1597_v34 = vld [vmem:[%s2322_s13] ss:$0 sm:$0xff] }
 0x17a   : > { %1694 = vmatpush3.xpose.msk.msra.mxu0 %vm502_vm1, %v918_v37  ;;  %1695 = vmatprep.mubr.msk.f32.mxu0 %vm1931_vm0, %v1932_v6 }
 0x17b   : > { %1773 = vmatprep.subr.bf16.mxu0 %v1930_v3 }
 0x17d   : > { %1696 = vmatmul.mubr.msk.f32.vlgmr.msra.gmra.mrb[6].mxu0 %vm502_vm1, %v916_v38 }
 0x17e   : > { %1711 = vmatprep.mubr.msk.f32.mxu0 %vm1931_vm0, %v1932_v6  ;;  %1775 = vmatpush3.bf16.msra.mxu0 %v1774_v1 }
 0x17f   : > { %1776 = vmatprep.subr.bf16.mxu0 %v1930_v3 }
 0x182   : > { %1778 = vmatpush3.bf16.msra.mxu0 %v1777_v8 }
 0x183   : > { %1785 = vmatprep.subr.bf16.mxu0 %v1930_v3 }
 0x24c   : > { %v825_v40 = vpop.f32.mrb[4].mxu0 }
 0x24d   : > { %v829_v41 = vsel %vm751_vm3, %v825_v40, -1e+09  ;;  %v1687_v42 = vpop.f32.mrb[5].mxu0 }
 0x24e   : > { %v831_v43 = vsel %vm830_vm4, %v829_v41, -inf }
 0x24f   : > { %832 = vmax.xlane.f32.xlu1 %v831_v43 }
 0x250   : > { %v989_v44 = vpop.f32.mrb[6].mxu0 }
 0x251   : > { %v993_v45 = vsel %vm751_vm3, %v989_v44, -1e+09  ;;  %v1697_v46 = vpop.f32.mrb[7].mxu0 }
 0x252   : > { %v994_v47 = vsel %vm830_vm4, %v993_v45, -inf }
 0x253   : > { %995 = vmax.xlane.f32.xlu0 %v994_v47  ;;  %v1591_v47 = vld [vmem:[%s2316_s7] ss:$0 sm:$0xff] }
 0x269   : > { %1004 = vrot.lane.b32.xlu0 %v573_v27, %s1933_s20  ;;  %s485_s20 = scalar_lea.vmem [#allocation2], %s1571_s17  ;;  %s1870_s17 = sshll.u32 %s1936_s22, 4  ;;  %s1871_s17 = int_to_ptr.vmem [resolvable:$false] %s1870_s17 }
 0x26a   : > { %s1508_s26 = sshll.u32 %s485_s20, 4  ;;  %s1872_s24 = scalar_lea.vmem %s1871_s17, 256  ;;  %s2268_s26 = int_to_ptr.vmem [resolvable:$true] %s1508_s26 }
 0x26b   : > { %s1866_s1 = scalar_lea.vmem %s2268_s26, 128  ;;  %p1873_p0 = scmp.lt.s32.totalorder %s2268_s26, %s1871_s17 }
 0x26c   : > { %p1867_p11 = scmp.ne.s32.totalorder %s2268_s26, %s1866_s1  ;;  %p1874_p1 = scmp.lt.s32.totalorder %s1872_s24, %s1866_s1 }
 0x26e   : > { %p1868_p12 = pnand %p1867_p11, %p2055_p5  ;;  %p1875_p2 = por %p1874_p1, %p1873_p0 }
 0x270   : > { %p1869_p13 = pneg %p1868_p12 }
 0x272   : > { %p1876_p3 = pnand %p1875_p2, %p1869_p13 }
 0x2dc   : > { %v833_v48 = vpop.xlane.xlu1 %832 }
 0x2dd   : > { %v834_v49 = vsub.f32 %v829_v41, %v833_v48 }
 0x2df   : > { %v835_v50 = vmul.f32 1.442695, %v834_v49  ;;  %v1592_v49 = vld [vmem:[%s2317_s8] ss:$0 sm:$0xff] }
 0x2e0   : > { %v996_v51 = vpop.xlane.xlu0 %995 }
 0x2e1   : > { %1848 = vpow2.f32 %v835_v50  ;;  %v997_v52 = vsub.f32 %v993_v45, %v996_v51 }
 0x2e3   : > { %v998_v53 = vmul.f32 1.442695, %v997_v52  ;;  %v1367_v52 = vld [vmem:[%s2320_s11] sm:$0xff] }
 0x2e4   : > { %v1005_v55 = vpop.permute.xlu0 %1004 }
 0x2e5   : > { %1850 = vpow2.f32 %v998_v53  ;;  %v1368_v53 = vld [vmem:[%s2320_s11 + $0x8] sm:$0xff] }
 0x2eb   : > { %v1849_v54 = vpop.eup %1848 }
 0x2ec   : > { %1691 = vmatmul.mubr.msk.f32.vlgmr.msra.gmra.mrb[2].mxu1 %vm830_vm4, %v1849_v54  ;;  %v837_v56 = vsel %vm830_vm4, %v1849_v54, 0.0  ;;  %v1792_v54 = vpack.c.bf16 %v1368_v53, %v1367_v52 }
 0x2ed   : > { %1699 = vmatpush3.msra.mxu1 %v1005_v55  ;;  %838 = vadd.xlane.f32.xlu1 %v837_v56  ;;  %v1369_v55 = vld [vmem:[%s2320_s11 + $0x10] sm:$0xff]  ;;  %v1370_v56 = vld [vmem:[%s2320_s11 + $0x18] sm:$0xff] }
 0x2ee   : > { %1700 = vmatprep.mubr.msk.f32.mxu1 %vm1931_vm0, %v1932_v6  ;;  %1779 = vmatprep.subr.bf16.mxu1 %v1930_v3 }
 0x2ef   : > { %v1851_v57 = vpop.eup %1850 }
 0x2f0   : > { %1701 = vmatmul.mubr.msk.f32.vlgmr.msra.gmra.mrb[4].mxu1 %vm830_vm4, %v1851_v57  ;;  %v1000_v58 = vsel %vm830_vm4, %v1851_v57, 0.0  ;;  %v1795_v57 = vpack.c.bf16 %v1370_v56, %v1369_v55 }
 0x2f1   : > { %1001 = vadd.xlane.f32.xlu1 %v1000_v58  ;;  %1722 = vmatprep.mubr.msk.f32.mxu1 %vm1931_vm0, %v1932_v6  ;;  %v1371_v58 = vld [vmem:[%s2320_s11 + $0x20] sm:$0xff] }
 0x2f2   : > { %1781 = vmatpush3.bf16.msra.mxu1 %v1780_v61  ;;  %v1798_v60 = vpack.c.bf16 %v1372_v59, %v1371_v58  ;;  %v1373_v61 = vld [vmem:[%s2320_s11 + $0x30] sm:$0xff] }
 0x2f3   : > { %1782 = vmatprep.subr.bf16.mxu1 %v1930_v3  ;;  %v1801_v63 = vpack.c.bf16 %v1374_v62, %v1373_v61 }
 0x2f6   : > { %1784 = vmatpush3.bf16.msra.mxu1 %v1783_v4 }
 0x2f7   : > { %1791 = vmatprep.subr.bf16.mxu1 %v1930_v3 }
 0x37a   : > { %v839_v9 = vpop.xlane.xlu1 %838 }
 0x37b   : > { %1852 = vrcp.f32 %v839_v9 }
 0x37e   : > { %v1002_v10 = vpop.xlane.xlu1 %1001 }
 0x37f   : > { %1854 = vrcp.f32 %v1002_v10 }
 0x385   : > { %v1853_v11 = vpop.eup %1852 }
 0x389   : > { %v1855_v15 = vpop.eup %1854 }
 0x3bf   : > { %v909_v12 = vpop.f32.mrb[2].mxu1 }
 0x3c0   : > { %v914_v13 = vmul.f32 %v1853_v11, %v909_v12  ;;  %v1692_v14 = vpop.f32.mrb[3].mxu1 }
 0x3c1   : > { %v1595_v14 = vld [vmem:[%s2321_s12] ss:$0 sm:$0xff] }
 0x3c2   : > { %1723 = vmatmul.mubr.msk.f32.vlgmr.msra.gmra.mrb[6].mxu1 %vm502_vm1, %v914_v13 }
 0x3c3   : > { %v1076_v16 = vpop.f32.mrb[4].mxu1  ;;  %1752 = vmatprep.mubr.msk.f32.mxu1 %vm1931_vm0, %v1932_v6  ;;  %1793 = vmatpush3.bf16.msra.mxu1 %v1792_v54 }
 0x3c4   : > { %v1081_v18 = vmul.f32 %v1855_v15, %v1076_v16  ;;  %v1702_v19 = vpop.f32.mrb[5].mxu1  ;;  %1794 = vmatprep.subr.bf16.mxu1 %v1930_v3 }
 0x3c6   : > { %1712 = vmatmul.mubr.msk.f32.vlgmr.msra.gmra.mrb[8].mxu0 %vm502_vm1, %v1081_v18 }
 0x3c7   : > { %1733 = vmatprep.mubr.msk.f32.mxu0 %vm1931_vm0, %v1932_v6  ;;  %1787 = vmatpush3.bf16.msra.mxu0 %v1786_v35  ;;  %v1598_v35 = vld [vmem:[%s2323_s14] ss:$0 sm:$0xff] }
 0x3c8   : > { %1788 = vmatprep.subr.bf16.mxu0 %v1930_v3  ;;  %1796 = vmatpush3.bf16.msra.mxu1 %v1795_v57 }
 0x3c9   : > { %1797 = vmatprep.subr.bf16.mxu1 %v1930_v3 }
 0x3cc   : > { %1799 = vmatpush3.bf16.msra.mxu1 %v1798_v60 }
 0x3cd   : > { %1800 = vmatprep.subr.bf16.mxu1 %v1930_v3 }
 0x3d0   : > { %1802 = vmatpush3.bf16.msra.mxu1 %v1801_v63 }
 0x495   : > { %v1224_v20 = vpop.f32.mrb[6].mxu1 }
 0x496   : > { %v1724_v21 = vpop.f32.mrb[7].mxu1 }
 0x499   : > { %v1151_v22 = vpop.f32.mrb[8].mxu0 }
 0x49a   : > { %v1225_v24 = vadd.f32 %v1224_v20, %v1151_v22  ;;  %v1713_v25 = vpop.f32.mrb[9].mxu0 }
 0x49c   : > { %v1235_v26 = vadd.f32 %v1590_v23, %v1225_v24 }
 0x49e   : > { %v1236_v27 = vadd.f32 %v1235_v26, %v2108_v17  ;;  %v1276_v17 = vld [vmem:[%s2318_s9 + $0x10] sm:$0xff] }
 0x49f   : > { %v1789_v37 = vpack.c.bf16 %v1277_v36, %v1276_v17 }
 0x4a0   : > { %v1239_v28 = vsel %vm502_vm1, %v1236_v27, 0.0 }
 0x4a1   : > { %1240 = vadd.xlane.f32.xlu1 %v1239_v28  ;;  %1790 = vmatpush3.bf16.msra.mxu0 %v1789_v37 }
 0x52e   : > { %v1241_v29 = vpop.xlane.xlu1 %1240 }
 0x52f   : > { %v1243_v30 = vmul.f32 0.03125, %v1241_v29 }
 0x531   : > { %v1244_v31 = vsub.f32 %v1236_v27, %v1243_v30 }
 0x533   : > { %v1245_v32 = vmul.f32 %v1244_v31, %v1244_v31 }
 0x535   : > { %v1246_v6 = vsel %vm502_vm1, %v1245_v32, 0.0 }
 0x536   : > { %1247 = vadd.xlane.f32.xlu1 %v1246_v6 }
 0x5c3   : > { %v1248_v38 = vpop.xlane.xlu1 %1247 }
 0x5c4   : > { %v1249_v39 = vmul.f32 0.03125, %v1248_v38 }
 0x5c6   : > { %v1250_v40 = vadd.f32 1e-05, %v1249_v39 }
 0x5c8   : > { %1856 = vrsqrt.f32 %v1250_v40  ;;  %vm1253_vm5 = vcmp.eq.f32.partialorder %v1250_v40, inf  ;;  %v1256_v43 = vand.u32 2147483648, %v1250_v40  ;;  %vm1255_vm6 = vcmp.eq.f32.partialorder %v1250_v40, 0.0 }
 0x5d2   : > { %v1857_v41 = vpop.eup %1856 }
 0x5d3   : > { %v1252_v42 = vmul.f32 %v1857_v41, %v1250_v40 }
 0x5d5   : > { %v1254_v44 = vsel %vm1253_vm5, %v1250_v40, %v1252_v42 }
 0x5d6   : > { %v1257_v45 = vsel %vm1255_vm6, %v1256_v43, %v1254_v44 }
 0x5d7   : > { %1858 = vrcp.f32 %v1257_v45 }
 0x5e1   : > { %v1859_v46 = vpop.eup %1858 }
 0x5e2   : > { %v1259_v48 = vmul.f32 %v1859_v46, %v1244_v31 }
 0x5e4   : > { %v1266_v50 = vmul.f32 %v1591_v47, %v1259_v48 }
 0x5e6   : > { %v1273_v51 = vadd.f32 %v1592_v49, %v1266_v50 }
 0x5e8   : > { %1734 = vmatmul.mubr.msk.f32.vlgmr.msra.gmra.mrb[10].mxu0 %vm502_vm1, %v1273_v51 }
 0x6bb   : > { %v1354_v1 = vpop.f32.mrb[10].mxu0 }
 0x6bc   : > { %v1355_v2 = vadd.f32 %v1593_v0, %v1354_v1  ;;  %v1735_v4 = vpop.f32.mrb[11].mxu0 }
 0x6be   : > { %v1359_v5 = vmul.f32 %v1355_v2, %v1355_v2  ;;  %v1358_v11 = vmul.f32 0.5, %v1355_v2 }
 0x6c0   : > { %v1360_v7 = vmul.f32 %v1359_v5, %v1355_v2 }
 0x6c2   : > { %v1361_v3 = vmul.f32 0.044715, %v1360_v7 }
 0x6c4   : > { %v1362_v8 = vadd.f32 %v1361_v3, %v1355_v2 }
 0x6c6   : > { %v1363_v9 = vmul.f32 0.7978846, %v1362_v8 }
 0x6c8   : > { %1860 = vtanh.f32 %v1363_v9 }
 0x6d2   : > { %v1861_v10 = vpop.eup %1860 }
 0x6d3   : > { %v1365_v12 = vadd.f32 1.0, %v1861_v10 }
 0x6d5   : > { %v1366_v13 = vmul.f32 %v1365_v12, %v1358_v11 }
 0x6d7   : > { %1753 = vmatmul.mubr.msk.f32.vlgmr.msra.gmra.mrb[8].mxu1 %vm1382_vm7, %v1366_v13 }
 0x7aa   : > { %v1452_v15 = vpop.f32.mrb[8].mxu1 }
 0x7ab   : > { %v1453_v16 = vadd.f32 %v1595_v14, %v1452_v15  ;;  %v1754_v18 = vpop.f32.mrb[9].mxu1 }
 0x7ad   : > { %v1456_v19 = vadd.f32 %v1453_v16, %v1273_v51 }
 0x7af   : > { %v1459_v20 = vsel %vm502_vm1, %v1456_v19, 0.0 }
 0x7b0   : > { %1460 = vadd.xlane.f32.xlu1 %v1459_v20 }
 0x83d   : > { %v1461_v21 = vpop.xlane.xlu1 %1460 }
 0x83e   : > { %v1462_v22 = vmul.f32 0.03125, %v1461_v21 }
 0x840   : > { %v1463_v23 = vsub.f32 %v1456_v19, %v1462_v22 }
 0x842   : > { %v1464_v24 = vmul.f32 %v1463_v23, %v1463_v23 }
 0x844   : > { %v1465_v25 = vsel %vm502_vm1, %v1464_v24, 0.0 }
 0x845   : > { %1466 = vadd.xlane.f32.xlu1 %v1465_v25 }
 0x8d2   : > { %v1467_v26 = vpop.xlane.xlu1 %1466 }
 0x8d3   : > { %v1468_v27 = vmul.f32 0.03125, %v1467_v26 }
 0x8d5   : > { %v1469_v28 = vadd.f32 1e-05, %v1468_v27 }
 0x8d7   : > { %1862 = vrsqrt.f32 %v1469_v28  ;;  %vm1472_vm8 = vcmp.eq.f32.partialorder %v1469_v28, inf  ;;  %v1475_v31 = vand.u32 2147483648, %v1469_v28  ;;  %vm1474_vm9 = vcmp.eq.f32.partialorder %v1469_v28, 0.0 }
 0x8e1   : > { %v1863_v29 = vpop.eup %1862 }
 0x8e2   : > { %v1471_v30 = vmul.f32 %v1863_v29, %v1469_v28 }
 0x8e4   : > { %v1473_v32 = vsel %vm1472_vm8, %v1469_v28, %v1471_v30 }
 0x8e5   : > { %v1476_v6 = vsel %vm1474_vm9, %v1475_v31, %v1473_v32 }
 0x8e6   : > { %1864 = vrcp.f32 %v1476_v6 }
 0x8f0   : > { %v1865_v33 = vpop.eup %1864 }
 0x8f1   : > { %v1478_v17 = vmul.f32 %v1865_v33, %v1463_v23 }
 0x8f3   : > { %v1485_v36 = vmul.f32 %v1597_v34, %v1478_v17 }
 0x8f5   : > { %v1492_v37 = vadd.f32 %v1598_v35, %v1485_v36 }
 0x8f7   : > { %1493 = vst.msk [vmem:[%s485_s20] sm:$0xff] %vm502_vm1, %v1492_v37 }
 0x8f8   : > { %1879 = shalt.err (!%p1876_p3)
}
 0x8f9   : > { %s1880_s0 = scalar_lea.hbm %s2266_s2, 128  ;;  %s1884_s25 = scalar_lea.hbm %s2324_s15, 256 }
 0x8fa   : > { %p1881_p4 = scmp.ne.s32.totalorder %s2266_s2, %s1880_s0  ;;  %p1885_p9 = scmp.lt.u32.totalorder %s2266_s2, %s2324_s15 }
 0x8fb   : > { %p1886_p10 = scmp.lt.u32.totalorder %s1884_s25, %s1880_s0  ;;  %p1888_p12 = scmp.lt.u32.totalorder %s1880_s0, %s2266_s2 }
 0x8fc   : > { %p1882_p7 = pnand %p1881_p4, %p2055_p5 }
 0x8fd   : > { %p1887_p11 = por %p1886_p10, %p1885_p9 }
 0x8fe   : > { %p1883_p8 = pneg %p1882_p7 }
 0x8ff   : > { %p1889_p13 = por %p1888_p12, %p1887_p11 }
 0x901   : > { %p1890_p0 = pnand %p1889_p13, %p1883_p8 }
 0x903   : > { %1893 = shalt.err (!%p1890_p0)
}
 0x904   : > { %1803 = dma.vmem_to_hbm [thread:$0]  (%p2055_p5), %s2268_s26, 128, %s2266_s2, %s1495_s27  }
 0x905 PF: > { %p1809_p1 = scmp.ge.s32.totalorder %s1928_s21, 2  ;;  %s1520_s1 = sand.u32 1, %s1916_s18  }
 0x906   : > { %s1521_s22 = scalar_lea.sflag [#allocation3], %s1520_s1 }
 0x907   : > { %p1806_p2 = pnand %p1809_p1, %p2059_p6 }
 0x909   : > { %1911 = dma.done.wait (!%p1806_p2), %s1521_s22, 128  }
 0x90a   : > { %1913 = vsyncadd (!%p1806_p2), %s1521_s22, 4294967168  ;;  %s2339_s21 = sld [smem:[#allocation6_spill]]  ;;  %s2340_s17 = sld [smem:[#allocation5_spill]] }
 0x90b   : > { %s2341_s20 = sld [smem:[#allocation7_spill]]  ;;  %s2342_s18 = smov %s1920_s19 }
 0x910   : > { %p25_p3 = scmp.ge.s32.totalorder %s2339_s21, 4   ;;  %s2343_s19 = smov %s2340_s17 }
 0x912   :  { %27 = sbr.rel (!%p25_p3) target bundleno = 7 (0x7), region = 116 }
 0x919   :  { %1526 = vsyncpa [#allocation3], 1 }
 0x91a   :  { %1528 = vsyncpa [#allocation3 + $0x1], 1 }

</bundles_post_ra>
